<compile_context>
chip_gen: v5e
topology: v5e:2x2
jax: 0.10.0
libtpu: 0.0.40
codegen_flags: <defaults>
</compile_context>

<pallas_src>
import math
from functools import partial

import numpy as np
import jax
import jax.numpy as jnp
from jax.experimental import pallas as pl
from jax.experimental.pallas import tpu as pltpu


# ----------------------------- in-kernel helpers -----------------------------

def _layernorm(x, g, b, eps=1e-6):
    mu = jnp.mean(x, axis=-1, keepdims=True)
    xc = x - mu
    var = jnp.mean(xc * xc, axis=-1, keepdims=True)
    return xc * jax.lax.rsqrt(var + eps) * g + b


def _erf(z):
    # Abramowitz & Stegun 7.1.26 (|err| <= 1.5e-7); exp/mul/add only so it
    # lowers cleanly in Mosaic (no reliance on a lax.erf lowering).
    p = 0.3275911
    a1, a2, a3, a4, a5 = (0.254829592, -0.284496736, 1.421413741,
                          -1.453152027, 1.061405429)
    az = jnp.abs(z)
    t = 1.0 / (1.0 + p * az)
    poly = ((((a5 * t + a4) * t + a3) * t + a2) * t + a1) * t
    e = 1.0 - poly * jnp.exp(-az * az)
    return jnp.where(z >= 0.0, e, -e)


def _gelu_erf(x):
    # Exact (erf) GELU, matching timm's default nn.GELU.
    return 0.5 * x * (1.0 + _erf(x * 0.7071067811865476))


# ------------------------------- fused kernel --------------------------------

def _vit_forward_kernel(patches_ref, pw_ref, pb_ref, cls_ref, pos_ref, mask_ref,
                        ln1g_ref, ln1b_ref, wqkv_ref, bqkv_ref,
                        wproj_ref, bproj_ref, ln2g_ref, ln2b_ref,
                        w1_ref, b1_ref, w2_ref, b2_ref,
                        lnfg_ref, lnfb_ref,
                        out_ref, tok_ref,
                        *, batch, n_patches, heads, discard):
    D = pw_ref.shape[1]
    S = n_patches + 1
    T = batch * S
    Dh = D // heads
    depth = wqkv_ref.shape[0]
    scale = 1.0 / math.sqrt(Dh)
    bf16 = jnp.bfloat16

    # ---- patch embedding + CLS prepend + positional embedding (fused) ----
    emb = jnp.dot(patches_ref[...].astype(bf16), pw_ref[...],
                  preferred_element_type=jnp.float32) + pb_ref[...]      # [B*N, D]
    pos = pos_ref[...]                                                   # [S, D]
    cls = cls_ref[...]                                                   # [1, D]
    for b in range(batch):                                               # static
        tok_ref[b * S:b * S + 1, :] = cls + pos[0:1, :]
        tok_ref[b * S + 1:(b + 1) * S, :] = (
            emb[b * n_patches:(b + 1) * n_patches, :] + pos[1:, :])
    x0 = tok_ref[...]                                                    # [T, D]

    # Block-diagonal mask keeps batches independent while all B*S tokens share
    # one lane-dense attention pass.
    attn_mask = mask_ref[...]                                            # [T, T]

    def block(d, x):
        # --- attention (pre-LN) ---
        h = _layernorm(x, ln1g_ref[d], ln1b_ref[d])
        qkv = jnp.dot(h.astype(bf16), wqkv_ref[d],
                      preferred_element_type=jnp.float32) + bqkv_ref[d]  # [T, 3D]
        q = qkv[:, 0:D] * scale          # fold 1/sqrt(Dh) into q, off the SxS path
        k = qkv[:, D:2 * D]
        v = qkv[:, 2 * D:3 * D]
        wproj = wproj_ref[d]
        acc = jnp.zeros((T, D), jnp.float32)
        for hh in range(heads):          # static unroll; heads merge into the proj
            sl = slice(hh * Dh, (hh + 1) * Dh)
            qh = q[:, sl].astype(bf16)
            kh = k[:, sl].astype(bf16)
            vh = v[:, sl].astype(bf16)
            s = jnp.einsum('qd,kd->qk', qh, kh,
                           preferred_element_type=jnp.float32)           # [T, T]
            s = s + attn_mask
            s = s - jnp.max(s, axis=-1, keepdims=True)
            p = jnp.exp(s)
            p = p * pl.reciprocal(jnp.sum(p, axis=-1, keepdims=True), approx=True)
            oh = jnp.dot(p.astype(bf16), vh,
                         preferred_element_type=jnp.float32)             # [T, Dh]
            # concat-free head merge: o_h @ Wproj[h-th 32-row block]
            acc = acc + jnp.dot(oh.astype(bf16), wproj[sl, :],
                                preferred_element_type=jnp.float32)
        x = x + acc + bproj_ref[d]

        # --- MLP (pre-LN) ---
        h2 = _layernorm(x, ln2g_ref[d], ln2b_ref[d])
        m = jnp.dot(h2.astype(bf16), w1_ref[d],
                    preferred_element_type=jnp.float32) + b1_ref[d]
        m = _gelu_erf(m)
        m = jnp.dot(m.astype(bf16), w2_ref[d],
                    preferred_element_type=jnp.float32) + b2_ref[d]
        return x + m

    x = jax.lax.fori_loop(0, depth, block, x0)

    # --- final LayerNorm, drop CLS, write lane-dense [B, S-discard, D] ---
    y = _layernorm(x, lnfg_ref[...], lnfb_ref[...])
    for b in range(batch):
        out_ref[b] = y[b * S + discard:(b + 1) * S, :]


# --------------------------------- wrapper -----------------------------------

def timm_wrapper_forward(x_nchw, params, *, patch, heads, discard):
    """forward_features(x)[:, discard:] for the synthetic ViT (single fused kernel)."""
    B, C, H, W = x_nchw.shape
    hp, wp = H // patch, W // patch
    n_patches = hp * wp
    S = n_patches + 1
    T = B * S
    D = params['patch_w'].shape[1]

    # glue: NCHW -> [B*N, C*p*p] patches (matches Conv2d weight flatten order)
    patches = (x_nchw
               .reshape(B, C, hp, patch, wp, patch)
               .transpose(0, 2, 4, 1, 3, 5)
               .reshape(B * n_patches, C * patch * patch))

    # Compile-time constant block-diagonal attention mask over flattened tokens.
    tb = np.repeat(np.arange(B), S)
    attn_mask = jnp.asarray(np.where(tb[:, None] == tb[None, :], 0.0, -1e9),
                            dtype=jnp.float32)

    kernel = partial(_vit_forward_kernel, batch=B, n_patches=n_patches,
                     heads=heads, discard=discard)

    # Whole model (<1 MiB) fits VMEM on every TPU generation; no grid needed.
    # TODO(synk): at real ViT sizes (D=768, S=197) add a token-parallel grid axis
    # (v7x dual TC) and K-tile / single-buffer the per-block weights to fit
    # v7x's 64 MiB VMEM.
    return pl.pallas_call(
        kernel,
        out_shape=jax.ShapeDtypeStruct((B, S - discard, D), jnp.float32),
        scratch_shapes=[pltpu.VMEM((T, D), jnp.float32)],
    )(patches, params['patch_w'], params['patch_b'], params['cls'],
      params['pos'], attn_mask,
      params['ln1_g'], params['ln1_b'], params['wqkv'], params['bqkv'],
      params['wproj'], params['bproj'], params['ln2_g'], params['ln2_b'],
      params['w1'], params['b1'], params['w2'], params['b2'],
      params['ln_f_g'], params['ln_f_b'])


# ----------------------------- synthetic weights ------------------------------

def init_params(key, *, in_chans, patch, dim, depth, heads, mlp_dim, n_tokens):
    del heads  # head count only affects the kernel, not parameter shapes
    ks = jax.random.split(key, 7)
    s = 0.02
    f32, bf16 = jnp.float32, jnp.bfloat16

    def norm(k, shape, dtype):
        return (s * jax.random.normal(k, shape, f32)).astype(dtype)

    cpp = in_chans * patch * patch
    return {
        # patch embed / tokens (matmul weights stored bf16 for the MXU)
        'patch_w': norm(ks[0], (cpp, dim), bf16),
        'patch_b': jnp.zeros((1, dim), f32),
        'cls': norm(ks[1], (1, dim), f32),
        'pos': norm(ks[2], (n_tokens, dim), f32),
        'ln_f_g': jnp.ones((1, dim), f32),
        'ln_f_b': jnp.zeros((1, dim), f32),
        # per-block weights stacked along a leading depth axis (single fused call)
        'ln1_g': jnp.ones((depth, 1, dim), f32),
        'ln1_b': jnp.zeros((depth, 1, dim), f32),
        'wqkv': norm(ks[3], (depth, dim, 3 * dim), bf16),
        'bqkv': jnp.zeros((depth, 1, 3 * dim), f32),
        'wproj': norm(ks[4], (depth, dim, dim), bf16),
        'bproj': jnp.zeros((depth, 1, dim), f32),
        'ln2_g': jnp.ones((depth, 1, dim), f32),
        'ln2_b': jnp.zeros((depth, 1, dim), f32),
        'w1': norm(ks[5], (depth, dim, mlp_dim), bf16),
        'b1': jnp.zeros((depth, 1, mlp_dim), f32),
        'w2': norm(ks[6], (depth, mlp_dim, dim), bf16),
        'b2': jnp.zeros((depth, 1, dim), f32),
    }


# ----------------------------------- main -------------------------------------

if __name__ == "__main__":
    # Small synthetic ViT consistent with the module's forward semantics.
    B, C, RES, PATCH = 2, 3, 16, 8
    DIM, DEPTH, HEADS = 128, 2, 4      # lane-dense hidden dim (multiple of 128)
    MLP = 4 * DIM
    N = (RES // PATCH) ** 2            # 4 patches
    SEQ = N + 1                        # + CLS token
    DISCARD = 1                        # model name without 'reg'

    key = jax.random.PRNGKey(0)
    k_x, k_p = jax.random.split(key)
    x = jax.random.normal(k_x, (B, C, RES, RES), jnp.float32)
    params = init_params(k_p, in_chans=C, patch=PATCH, dim=DIM, depth=DEPTH,
                         heads=HEADS, mlp_dim=MLP, n_tokens=SEQ)

    fwd = jax.jit(partial(timm_wrapper_forward, patch=PATCH, heads=HEADS,
                          discard=DISCARD))
    out = jax.block_until_ready(fwd(x, params))

    assert out.shape == (B, N, DIM), out.shape
    assert bool(jnp.all(jnp.isfinite(out)))
    # TODO(synk): timm pretrained checkpoint loading is not reproducible in-script;
    # deterministic synthetic weights are used instead.
    print("KERNEL_OK")
</pallas_src>

<mosaic_0001>
module attributes {stable_mosaic.version = 11 : i64} {
  func.func @_vit_forward_kernel(%arg0: memref<8x192xf32, #tpu.memory_space<vmem>>, %arg1: memref<192x128xbf16, #tpu.memory_space<vmem>>, %arg2: memref<1x128xf32, #tpu.memory_space<vmem>>, %arg3: memref<1x128xf32, #tpu.memory_space<vmem>>, %arg4: memref<5x128xf32, #tpu.memory_space<vmem>>, %arg5: memref<10x10xf32, #tpu.memory_space<vmem>>, %arg6: memref<2x1x128xf32, #tpu.memory_space<vmem>>, %arg7: memref<2x1x128xf32, #tpu.memory_space<vmem>>, %arg8: memref<2x128x384xbf16, #tpu.memory_space<vmem>>, %arg9: memref<2x1x384xf32, #tpu.memory_space<vmem>>, %arg10: memref<2x128x128xbf16, #tpu.memory_space<vmem>>, %arg11: memref<2x1x128xf32, #tpu.memory_space<vmem>>, %arg12: memref<2x1x128xf32, #tpu.memory_space<vmem>>, %arg13: memref<2x1x128xf32, #tpu.memory_space<vmem>>, %arg14: memref<2x128x512xbf16, #tpu.memory_space<vmem>>, %arg15: memref<2x1x512xf32, #tpu.memory_space<vmem>>, %arg16: memref<2x512x128xbf16, #tpu.memory_space<vmem>>, %arg17: memref<2x1x128xf32, #tpu.memory_space<vmem>>, %arg18: memref<1x128xf32, #tpu.memory_space<vmem>>, %arg19: memref<1x128xf32, #tpu.memory_space<vmem>>, %arg20: memref<2x4x128xf32, #tpu.memory_space<vmem>>, %arg21: memref<10x128xf32, #tpu.memory_space<vmem>>) attributes {dimension_semantics = [], scalar_prefetch = 0 : i64, scratch_operands = 1 : i64, tpu.core_type = #tpu.core_type<tc>} {
    %c0 = arith.constant 0 : index
    %c0_0 = arith.constant 0 : index
    %0 = vector.load %arg0[%c0, %c0_0] : memref<8x192xf32, #tpu.memory_space<vmem>>, vector<8x192xf32>
    %1 = arith.truncf %0 : vector<8x192xf32> to vector<8x192xbf16>
    %c0_1 = arith.constant 0 : index
    %c0_2 = arith.constant 0 : index
    %2 = vector.load %arg1[%c0_1, %c0_2] : memref<192x128xbf16, #tpu.memory_space<vmem>>, vector<192x128xbf16>
    %cst = arith.constant dense<0.000000e+00> : vector<8x128xf32>
    %3 = tpu.matmul %1, %2, %cst {dimension_numbers = #tpu.dot_dimension_numbers<[1], [0], [0], [1], [0, 0, 1, 1], [], []>} : vector<8x192xbf16>, vector<192x128xbf16>, vector<8x128xf32> -> vector<8x128xf32>
    %c0_3 = arith.constant 0 : index
    %c0_4 = arith.constant 0 : index
    %4 = vector.load %arg2[%c0_3, %c0_4] : memref<1x128xf32, #tpu.memory_space<vmem>>, vector<1x128xf32>
    %5 = vector.broadcast %4 : vector<1x128xf32> to vector<8x128xf32>
    %6 = arith.addf %3, %5 : vector<8x128xf32>
    %c0_5 = arith.constant 0 : index
    %c0_6 = arith.constant 0 : index
    %7 = vector.load %arg4[%c0_5, %c0_6] : memref<5x128xf32, #tpu.memory_space<vmem>>, vector<5x128xf32>
    %c0_7 = arith.constant 0 : index
    %c0_8 = arith.constant 0 : index
    %8 = vector.load %arg3[%c0_7, %c0_8] : memref<1x128xf32, #tpu.memory_space<vmem>>, vector<1x128xf32>
    %9 = vector.extract_strided_slice %7 {offsets = [0, 0], sizes = [1, 128], strides = [1, 1]} : vector<5x128xf32> to vector<1x128xf32>
    %10 = arith.addf %8, %9 : vector<1x128xf32>
    %c0_9 = arith.constant 0 : index
    %c0_10 = arith.constant 0 : index
    %11 = vector.load %arg21[%c0_9, %c0_10] : memref<10x128xf32, #tpu.memory_space<vmem>>, vector<1x128xf32>
    tpu.vector_store %arg21[%c0_9, %c0_10], %10 {strides = array<i32>} : memref<10x128xf32, #tpu.memory_space<vmem>>, vector<1x128xf32>,
    %12 = vector.extract_strided_slice %6 {offsets = [0, 0], sizes = [4, 128], strides = [1, 1]} : vector<8x128xf32> to vector<4x128xf32>
    %13 = vector.extract_strided_slice %7 {offsets = [1, 0], sizes = [4, 128], strides = [1, 1]} : vector<5x128xf32> to vector<4x128xf32>
    %14 = arith.addf %12, %13 : vector<4x128xf32>
    %c1 = arith.constant 1 : index
    %c0_11 = arith.constant 0 : index
    %15 = vector.load %arg21[%c1, %c0_11] : memref<10x128xf32, #tpu.memory_space<vmem>>, vector<4x128xf32>
    tpu.vector_store %arg21[%c1, %c0_11], %14 {strides = array<i32>} : memref<10x128xf32, #tpu.memory_space<vmem>>, vector<4x128xf32>,
    %16 = vector.extract_strided_slice %7 {offsets = [0, 0], sizes = [1, 128], strides = [1, 1]} : vector<5x128xf32> to vector<1x128xf32>
    %17 = arith.addf %8, %16 : vector<1x128xf32>
    %c5 = arith.constant 5 : index
    %c0_12 = arith.constant 0 : index
    %18 = vector.load %arg21[%c5, %c0_12] : memref<10x128xf32, #tpu.memory_space<vmem>>, vector<1x128xf32>
    tpu.vector_store %arg21[%c5, %c0_12], %17 {strides = array<i32>} : memref<10x128xf32, #tpu.memory_space<vmem>>, vector<1x128xf32>,
    %19 = vector.extract_strided_slice %6 {offsets = [4, 0], sizes = [4, 128], strides = [1, 1]} : vector<8x128xf32> to vector<4x128xf32>
    %20 = vector.extract_strided_slice %7 {offsets = [1, 0], sizes = [4, 128], strides = [1, 1]} : vector<5x128xf32> to vector<4x128xf32>
    %21 = arith.addf %19, %20 : vector<4x128xf32>
    %c6 = arith.constant 6 : index
    %c0_13 = arith.constant 0 : index
    %22 = vector.load %arg21[%c6, %c0_13] : memref<10x128xf32, #tpu.memory_space<vmem>>, vector<4x128xf32>
    tpu.vector_store %arg21[%c6, %c0_13], %21 {strides = array<i32>} : memref<10x128xf32, #tpu.memory_space<vmem>>, vector<4x128xf32>,
    %c0_14 = arith.constant 0 : index
    %c0_15 = arith.constant 0 : index
    %23 = vector.load %arg21[%c0_14, %c0_15] : memref<10x128xf32, #tpu.memory_space<vmem>>, vector<10x128xf32>
    %c0_16 = arith.constant 0 : index
    %c0_17 = arith.constant 0 : index
    %24 = vector.load %arg5[%c0_16, %c0_17] : memref<10x10xf32, #tpu.memory_space<vmem>>, vector<10x10xf32>
    %c0_i32 = arith.constant 0 : i32
    %c2_i32 = arith.constant 2 : i32
    %25 = arith.addi %c0_i32, %c2_i32 : i32
    %c1_i32 = arith.constant 1 : i32
    %26 = scf.for %arg22 = %c0_i32 to %25 step %c1_i32 iter_args(%arg23 = %23) -> (vector<10x128xf32>)  : i32 {
      %57 = arith.index_cast %arg22 : i32 to index
      %c0_34 = arith.constant 0 : index
      %c0_35 = arith.constant 0 : index
      %58 = vector.load %arg6[%57, %c0_34, %c0_35] : memref<2x1x128xf32, #tpu.memory_space<vmem>>, vector<1x1x128xf32>
      %59 = vector.shape_cast %58 : vector<1x1x128xf32> to vector<1x128xf32>
      %60 = arith.index_cast %arg22 : i32 to index
      %c0_36 = arith.constant 0 : index
      %c0_37 = arith.constant 0 : index
      %61 = vector.load %arg7[%60, %c0_36, %c0_37] : memref<2x1x128xf32, #tpu.memory_space<vmem>>, vector<1x1x128xf32>
      %62 = vector.shape_cast %61 : vector<1x1x128xf32> to vector<1x128xf32>
      %cst_38 = arith.constant dense<0.000000e+00> : vector<10xf32>
      %63 = vector.multi_reduction <add>, %arg23, %cst_38 [1] : vector<10x128xf32> to vector<10xf32>
      %64 = vector.shape_cast %63 : vector<10xf32> to vector<10x1xf32>
      %cst_39 = arith.constant 1.280000e+02 : f32
      %65 = vector.broadcast %cst_39 : f32 to vector<10x1xf32>
      %66 = arith.divf %64, %65 : vector<10x1xf32>
      %67 = vector.broadcast %66 : vector<10x1xf32> to vector<10x128xf32>
      %68 = arith.subf %arg23, %67 : vector<10x128xf32>
      %69 = arith.mulf %68, %68 : vector<10x128xf32>
      %cst_40 = arith.constant dense<0.000000e+00> : vector<10xf32>
      %70 = vector.multi_reduction <add>, %69, %cst_40 [1] : vector<10x128xf32> to vector<10xf32>
      %71 = vector.shape_cast %70 : vector<10xf32> to vector<10x1xf32>
      %cst_41 = arith.constant 1.280000e+02 : f32
      %72 = vector.broadcast %cst_41 : f32 to vector<10x1xf32>
      %73 = arith.divf %71, %72 : vector<10x1xf32>
      %cst_42 = arith.constant 9.99999997E-7 : f32
      %74 = vector.broadcast %cst_42 : f32 to vector<10x1xf32>
      %75 = arith.addf %73, %74 : vector<10x1xf32>
      %76 = math.rsqrt %75 : vector<10x1xf32>
      %77 = vector.broadcast %76 : vector<10x1xf32> to vector<10x128xf32>
      %78 = arith.mulf %68, %77 : vector<10x128xf32>
      %79 = vector.broadcast %59 : vector<1x128xf32> to vector<10x128xf32>
      %80 = arith.mulf %78, %79 : vector<10x128xf32>
      %81 = vector.broadcast %62 : vector<1x128xf32> to vector<10x128xf32>
      %82 = arith.addf %80, %81 : vector<10x128xf32>
      %83 = arith.truncf %82 : vector<10x128xf32> to vector<10x128xbf16>
      %84 = arith.index_cast %arg22 : i32 to index
      %c0_43 = arith.constant 0 : index
      %c0_44 = arith.constant 0 : index
      %85 = vector.load %arg8[%84, %c0_43, %c0_44] : memref<2x128x384xbf16, #tpu.memory_space<vmem>>, vector<1x128x384xbf16>
      %86 = vector.shape_cast %85 : vector<1x128x384xbf16> to vector<128x384xbf16>
      %cst_45 = arith.constant dense<0.000000e+00> : vector<10x384xf32>
      %87 = tpu.matmul %83, %86, %cst_45 {dimension_numbers = #tpu.dot_dimension_numbers<[1], [0], [0], [1], [0, 0, 1, 1], [], []>} : vector<10x128xbf16>, vector<128x384xbf16>, vector<10x384xf32> -> vector<10x384xf32>
      %88 = arith.index_cast %arg22 : i32 to index
      %c0_46 = arith.constant 0 : index
      %c0_47 = arith.constant 0 : index
      %89 = vector.load %arg9[%88, %c0_46, %c0_47] : memref<2x1x384xf32, #tpu.memory_space<vmem>>, vector<1x1x384xf32>
      %90 = vector.shape_cast %89 : vector<1x1x384xf32> to vector<1x384xf32>
      %91 = vector.broadcast %90 : vector<1x384xf32> to vector<10x384xf32>
      %92 = arith.addf %87, %91 : vector<10x384xf32>
      %93 = vector.extract_strided_slice %92 {offsets = [0, 0], sizes = [10, 128], strides = [1, 1]} : vector<10x384xf32> to vector<10x128xf32>
      %cst_48 = arith.constant 0.176776692 : f32
      %94 = vector.broadcast %cst_48 : f32 to vector<10x128xf32>
      %95 = arith.mulf %93, %94 : vector<10x128xf32>
      %96 = vector.extract_strided_slice %92 {offsets = [0, 128], sizes = [10, 128], strides = [1, 1]} : vector<10x384xf32> to vector<10x128xf32>
      %97 = vector.extract_strided_slice %92 {offsets = [0, 256], sizes = [10, 128], strides = [1, 1]} : vector<10x384xf32> to vector<10x128xf32>
      %98 = arith.index_cast %arg22 : i32 to index
      %c0_49 = arith.constant 0 : index
      %c0_50 = arith.constant 0 : index
      %99 = vector.load %arg10[%98, %c0_49, %c0_50] : memref<2x128x128xbf16, #tpu.memory_space<vmem>>, vector<1x128x128xbf16>
      %100 = vector.shape_cast %99 : vector<1x128x128xbf16> to vector<128x128xbf16>
      %cst_51 = arith.constant 0.000000e+00 : f32
      %101 = vector.broadcast %cst_51 : f32 to vector<10x128xf32>
      %102 = vector.extract_strided_slice %95 {offsets = [0, 0], sizes = [10, 32], strides = [1, 1]} : vector<10x128xf32> to vector<10x32xf32>
      %103 = arith.truncf %102 : vector<10x32xf32> to vector<10x32xbf16>
      %104 = vector.extract_strided_slice %96 {offsets = [0, 0], sizes = [10, 32], strides = [1, 1]} : vector<10x128xf32> to vector<10x32xf32>
      %105 = arith.truncf %104 : vector<10x32xf32> to vector<10x32xbf16>
      %106 = vector.extract_strided_slice %97 {offsets = [0, 0], sizes = [10, 32], strides = [1, 1]} : vector<10x128xf32> to vector<10x32xf32>
      %107 = arith.truncf %106 : vector<10x32xf32> to vector<10x32xbf16>
      "tpu.trace_start"() <{level = 10 : i32, message = "qd,kd->qk"}> : () -> ()
      %cst_52 = arith.constant dense<0.000000e+00> : vector<10x10xf32>
      %108 = tpu.matmul %103, %105, %cst_52 {dimension_numbers = #tpu.dot_dimension_numbers<[1], [1], [0], [0], [0, 0, 1, 0], [], []>} : vector<10x32xbf16>, vector<10x32xbf16>, vector<10x10xf32> -> vector<10x10xf32>
      "tpu.trace_stop"() : () -> ()
      %109 = arith.addf %108, %24 : vector<10x10xf32>
      %cst_53 = arith.constant dense<0xFF800000> : vector<10xf32>
      %110 = vector.multi_reduction <maximumf>, %109, %cst_53 [1] : vector<10x10xf32> to vector<10xf32>
      %111 = vector.shape_cast %110 : vector<10xf32> to vector<10x1xf32>
      %112 = vector.broadcast %111 : vector<10x1xf32> to vector<10x10xf32>
      %113 = arith.subf %109, %112 : vector<10x10xf32>
      %114 = math.exp %113 : vector<10x10xf32>
      %cst_54 = arith.constant dense<0.000000e+00> : vector<10xf32>
      %115 = vector.multi_reduction <add>, %114, %cst_54 [1] : vector<10x10xf32> to vector<10xf32>
      %116 = vector.shape_cast %115 : vector<10xf32> to vector<10x1xf32>
      %117 = tpu.reciprocal %116 {approx = true} : vector<10x1xf32> -> vector<10x1xf32>
      %118 = vector.broadcast %117 : vector<10x1xf32> to vector<10x10xf32>
      %119 = arith.mulf %114, %118 : vector<10x10xf32>
      %120 = arith.truncf %119 : vector<10x10xf32> to vector<10x10xbf16>
      %cst_55 = arith.constant dense<0.000000e+00> : vector<10x32xf32>
      %121 = tpu.matmul %120, %107, %cst_55 {dimension_numbers = #tpu.dot_dimension_numbers<[1], [0], [0], [1], [0, 0, 1, 1], [], []>} : vector<10x10xbf16>, vector<10x32xbf16>, vector<10x32xf32> -> vector<10x32xf32>
      %122 = arith.truncf %121 : vector<10x32xf32> to vector<10x32xbf16>
      %123 = vector.extract_strided_slice %100 {offsets = [0, 0], sizes = [32, 128], strides = [1, 1]} : vector<128x128xbf16> to vector<32x128xbf16>
      %cst_56 = arith.constant dense<0.000000e+00> : vector<10x128xf32>
      %124 = tpu.matmul %122, %123, %cst_56 {dimension_numbers = #tpu.dot_dimension_numbers<[1], [0], [0], [1], [0, 0, 1, 1], [], []>} : vector<10x32xbf16>, vector<32x128xbf16>, vector<10x128xf32> -> vector<10x128xf32>
      %125 = arith.addf %101, %124 : vector<10x128xf32>
      %126 = vector.extract_strided_slice %95 {offsets = [0, 32], sizes = [10, 32], strides = [1, 1]} : vector<10x128xf32> to vector<10x32xf32>
      %127 = arith.truncf %126 : vector<10x32xf32> to vector<10x32xbf16>
      %128 = vector.extract_strided_slice %96 {offsets = [0, 32], sizes = [10, 32], strides = [1, 1]} : vector<10x128xf32> to vector<10x32xf32>
      %129 = arith.truncf %128 : vector<10x32xf32> to vector<10x32xbf16>
      %130 = vector.extract_strided_slice %97 {offsets = [0, 32], sizes = [10, 32], strides = [1, 1]} : vector<10x128xf32> to vector<10x32xf32>
      %131 = arith.truncf %130 : vector<10x32xf32> to vector<10x32xbf16>
      "tpu.trace_start"() <{level = 10 : i32, message = "qd,kd->qk"}> : () -> ()
      %cst_57 = arith.constant dense<0.000000e+00> : vector<10x10xf32>
      %132 = tpu.matmul %127, %129, %cst_57 {dimension_numbers = #tpu.dot_dimension_numbers<[1], [1], [0], [0], [0, 0, 1, 0], [], []>} : vector<10x32xbf16>, vector<10x32xbf16>, vector<10x10xf32> -> vector<10x10xf32>
      "tpu.trace_stop"() : () -> ()
      %133 = arith.addf %132, %24 : vector<10x10xf32>
      %cst_58 = arith.constant dense<0xFF800000> : vector<10xf32>
      %134 = vector.multi_reduction <maximumf>, %133, %cst_58 [1] : vector<10x10xf32> to vector<10xf32>
      %135 = vector.shape_cast %134 : vector<10xf32> to vector<10x1xf32>
      %136 = vector.broadcast %135 : vector<10x1xf32> to vector<10x10xf32>
      %137 = arith.subf %133, %136 : vector<10x10xf32>
      %138 = math.exp %137 : vector<10x10xf32>
      %cst_59 = arith.constant dense<0.000000e+00> : vector<10xf32>
      %139 = vector.multi_reduction <add>, %138, %cst_59 [1] : vector<10x10xf32> to vector<10xf32>
      %140 = vector.shape_cast %139 : vector<10xf32> to vector<10x1xf32>
      %141 = tpu.reciprocal %140 {approx = true} : vector<10x1xf32> -> vector<10x1xf32>
      %142 = vector.broadcast %141 : vector<10x1xf32> to vector<10x10xf32>
      %143 = arith.mulf %138, %142 : vector<10x10xf32>
      %144 = arith.truncf %143 : vector<10x10xf32> to vector<10x10xbf16>
      %cst_60 = arith.constant dense<0.000000e+00> : vector<10x32xf32>
      %145 = tpu.matmul %144, %131, %cst_60 {dimension_numbers = #tpu.dot_dimension_numbers<[1], [0], [0], [1], [0, 0, 1, 1], [], []>} : vector<10x10xbf16>, vector<10x32xbf16>, vector<10x32xf32> -> vector<10x32xf32>
      %146 = arith.truncf %145 : vector<10x32xf32> to vector<10x32xbf16>
      %147 = vector.extract_strided_slice %100 {offsets = [32, 0], sizes = [32, 128], strides = [1, 1]} : vector<128x128xbf16> to vector<32x128xbf16>
      %cst_61 = arith.constant dense<0.000000e+00> : vector<10x128xf32>
      %148 = tpu.matmul %146, %147, %cst_61 {dimension_numbers = #tpu.dot_dimension_numbers<[1], [0], [0], [1], [0, 0, 1, 1], [], []>} : vector<10x32xbf16>, vector<32x128xbf16>, vector<10x128xf32> -> vector<10x128xf32>
      %149 = arith.addf %125, %148 : vector<10x128xf32>
      %150 = vector.extract_strided_slice %95 {offsets = [0, 64], sizes = [10, 32], strides = [1, 1]} : vector<10x128xf32> to vector<10x32xf32>
      %151 = arith.truncf %150 : vector<10x32xf32> to vector<10x32xbf16>
      %152 = vector.extract_strided_slice %96 {offsets = [0, 64], sizes = [10, 32], strides = [1, 1]} : vector<10x128xf32> to vector<10x32xf32>
      %153 = arith.truncf %152 : vector<10x32xf32> to vector<10x32xbf16>
      %154 = vector.extract_strided_slice %97 {offsets = [0, 64], sizes = [10, 32], strides = [1, 1]} : vector<10x128xf32> to vector<10x32xf32>
      %155 = arith.truncf %154 : vector<10x32xf32> to vector<10x32xbf16>
      "tpu.trace_start"() <{level = 10 : i32, message = "qd,kd->qk"}> : () -> ()
      %cst_62 = arith.constant dense<0.000000e+00> : vector<10x10xf32>
      %156 = tpu.matmul %151, %153, %cst_62 {dimension_numbers = #tpu.dot_dimension_numbers<[1], [1], [0], [0], [0, 0, 1, 0], [], []>} : vector<10x32xbf16>, vector<10x32xbf16>, vector<10x10xf32> -> vector<10x10xf32>
      "tpu.trace_stop"() : () -> ()
      %157 = arith.addf %156, %24 : vector<10x10xf32>
      %cst_63 = arith.constant dense<0xFF800000> : vector<10xf32>
      %158 = vector.multi_reduction <maximumf>, %157, %cst_63 [1] : vector<10x10xf32> to vector<10xf32>
      %159 = vector.shape_cast %158 : vector<10xf32> to vector<10x1xf32>
      %160 = vector.broadcast %159 : vector<10x1xf32> to vector<10x10xf32>
      %161 = arith.subf %157, %160 : vector<10x10xf32>
      %162 = math.exp %161 : vector<10x10xf32>
      %cst_64 = arith.constant dense<0.000000e+00> : vector<10xf32>
      %163 = vector.multi_reduction <add>, %162, %cst_64 [1] : vector<10x10xf32> to vector<10xf32>
      %164 = vector.shape_cast %163 : vector<10xf32> to vector<10x1xf32>
      %165 = tpu.reciprocal %164 {approx = true} : vector<10x1xf32> -> vector<10x1xf32>
      %166 = vector.broadcast %165 : vector<10x1xf32> to vector<10x10xf32>
      %167 = arith.mulf %162, %166 : vector<10x10xf32>
      %168 = arith.truncf %167 : vector<10x10xf32> to vector<10x10xbf16>
      %cst_65 = arith.constant dense<0.000000e+00> : vector<10x32xf32>
      %169 = tpu.matmul %168, %155, %cst_65 {dimension_numbers = #tpu.dot_dimension_numbers<[1], [0], [0], [1], [0, 0, 1, 1], [], []>} : vector<10x10xbf16>, vector<10x32xbf16>, vector<10x32xf32> -> vector<10x32xf32>
      %170 = arith.truncf %169 : vector<10x32xf32> to vector<10x32xbf16>
      %171 = vector.extract_strided_slice %100 {offsets = [64, 0], sizes = [32, 128], strides = [1, 1]} : vector<128x128xbf16> to vector<32x128xbf16>
      %cst_66 = arith.constant dense<0.000000e+00> : vector<10x128xf32>
      %172 = tpu.matmul %170, %171, %cst_66 {dimension_numbers = #tpu.dot_dimension_numbers<[1], [0], [0], [1], [0, 0, 1, 1], [], []>} : vector<10x32xbf16>, vector<32x128xbf16>, vector<10x128xf32> -> vector<10x128xf32>
      %173 = arith.addf %149, %172 : vector<10x128xf32>
      %174 = vector.extract_strided_slice %95 {offsets = [0, 96], sizes = [10, 32], strides = [1, 1]} : vector<10x128xf32> to vector<10x32xf32>
      %175 = arith.truncf %174 : vector<10x32xf32> to vector<10x32xbf16>
      %176 = vector.extract_strided_slice %96 {offsets = [0, 96], sizes = [10, 32], strides = [1, 1]} : vector<10x128xf32> to vector<10x32xf32>
      %177 = arith.truncf %176 : vector<10x32xf32> to vector<10x32xbf16>
      %178 = vector.extract_strided_slice %97 {offsets = [0, 96], sizes = [10, 32], strides = [1, 1]} : vector<10x128xf32> to vector<10x32xf32>
      %179 = arith.truncf %178 : vector<10x32xf32> to vector<10x32xbf16>
      "tpu.trace_start"() <{level = 10 : i32, message = "qd,kd->qk"}> : () -> ()
      %cst_67 = arith.constant dense<0.000000e+00> : vector<10x10xf32>
      %180 = tpu.matmul %175, %177, %cst_67 {dimension_numbers = #tpu.dot_dimension_numbers<[1], [1], [0], [0], [0, 0, 1, 0], [], []>} : vector<10x32xbf16>, vector<10x32xbf16>, vector<10x10xf32> -> vector<10x10xf32>
      "tpu.trace_stop"() : () -> ()
      %181 = arith.addf %180, %24 : vector<10x10xf32>
      %cst_68 = arith.constant dense<0xFF800000> : vector<10xf32>
      %182 = vector.multi_reduction <maximumf>, %181, %cst_68 [1] : vector<10x10xf32> to vector<10xf32>
      %183 = vector.shape_cast %182 : vector<10xf32> to vector<10x1xf32>
      %184 = vector.broadcast %183 : vector<10x1xf32> to vector<10x10xf32>
      %185 = arith.subf %181, %184 : vector<10x10xf32>
      %186 = math.exp %185 : vector<10x10xf32>
      %cst_69 = arith.constant dense<0.000000e+00> : vector<10xf32>
      %187 = vector.multi_reduction <add>, %186, %cst_69 [1] : vector<10x10xf32> to vector<10xf32>
      %188 = vector.shape_cast %187 : vector<10xf32> to vector<10x1xf32>
      %189 = tpu.reciprocal %188 {approx = true} : vector<10x1xf32> -> vector<10x1xf32>
      %190 = vector.broadcast %189 : vector<10x1xf32> to vector<10x10xf32>
      %191 = arith.mulf %186, %190 : vector<10x10xf32>
      %192 = arith.truncf %191 : vector<10x10xf32> to vector<10x10xbf16>
      %cst_70 = arith.constant dense<0.000000e+00> : vector<10x32xf32>
      %193 = tpu.matmul %192, %179, %cst_70 {dimension_numbers = #tpu.dot_dimension_numbers<[1], [0], [0], [1], [0, 0, 1, 1], [], []>} : vector<10x10xbf16>, vector<10x32xbf16>, vector<10x32xf32> -> vector<10x32xf32>
      %194 = arith.truncf %193 : vector<10x32xf32> to vector<10x32xbf16>
      %195 = vector.extract_strided_slice %100 {offsets = [96, 0], sizes = [32, 128], strides = [1, 1]} : vector<128x128xbf16> to vector<32x128xbf16>
      %cst_71 = arith.constant dense<0.000000e+00> : vector<10x128xf32>
      %196 = tpu.matmul %194, %195, %cst_71 {dimension_numbers = #tpu.dot_dimension_numbers<[1], [0], [0], [1], [0, 0, 1, 1], [], []>} : vector<10x32xbf16>, vector<32x128xbf16>, vector<10x128xf32> -> vector<10x128xf32>
      %197 = arith.addf %173, %196 : vector<10x128xf32>
      %198 = arith.addf %arg23, %197 : vector<10x128xf32>
      %199 = arith.index_cast %arg22 : i32 to index
      %c0_72 = arith.constant 0 : index
      %c0_73 = arith.constant 0 : index
      %200 = vector.load %arg11[%199, %c0_72, %c0_73] : memref<2x1x128xf32, #tpu.memory_space<vmem>>, vector<1x1x128xf32>
      %201 = vector.shape_cast %200 : vector<1x1x128xf32> to vector<1x128xf32>
      %202 = vector.broadcast %201 : vector<1x128xf32> to vector<10x128xf32>
      %203 = arith.addf %198, %202 : vector<10x128xf32>
      %204 = arith.index_cast %arg22 : i32 to index
      %c0_74 = arith.constant 0 : index
      %c0_75 = arith.constant 0 : index
      %205 = vector.load %arg12[%204, %c0_74, %c0_75] : memref<2x1x128xf32, #tpu.memory_space<vmem>>, vector<1x1x128xf32>
      %206 = vector.shape_cast %205 : vector<1x1x128xf32> to vector<1x128xf32>
      %207 = arith.index_cast %arg22 : i32 to index
      %c0_76 = arith.constant 0 : index
      %c0_77 = arith.constant 0 : index
      %208 = vector.load %arg13[%207, %c0_76, %c0_77] : memref<2x1x128xf32, #tpu.memory_space<vmem>>, vector<1x1x128xf32>
      %209 = vector.shape_cast %208 : vector<1x1x128xf32> to vector<1x128xf32>
      %cst_78 = arith.constant dense<0.000000e+00> : vector<10xf32>
      %210 = vector.multi_reduction <add>, %203, %cst_78 [1] : vector<10x128xf32> to vector<10xf32>
      %211 = vector.shape_cast %210 : vector<10xf32> to vector<10x1xf32>
      %cst_79 = arith.constant 1.280000e+02 : f32
      %212 = vector.broadcast %cst_79 : f32 to vector<10x1xf32>
      %213 = arith.divf %211, %212 : vector<10x1xf32>
      %214 = vector.broadcast %213 : vector<10x1xf32> to vector<10x128xf32>
      %215 = arith.subf %203, %214 : vector<10x128xf32>
      %216 = arith.mulf %215, %215 : vector<10x128xf32>
      %cst_80 = arith.constant dense<0.000000e+00> : vector<10xf32>
      %217 = vector.multi_reduction <add>, %216, %cst_80 [1] : vector<10x128xf32> to vector<10xf32>
      %218 = vector.shape_cast %217 : vector<10xf32> to vector<10x1xf32>
      %cst_81 = arith.constant 1.280000e+02 : f32
      %219 = vector.broadcast %cst_81 : f32 to vector<10x1xf32>
      %220 = arith.divf %218, %219 : vector<10x1xf32>
      %cst_82 = arith.constant 9.99999997E-7 : f32
      %221 = vector.broadcast %cst_82 : f32 to vector<10x1xf32>
      %222 = arith.addf %220, %221 : vector<10x1xf32>
      %223 = math.rsqrt %222 : vector<10x1xf32>
      %224 = vector.broadcast %223 : vector<10x1xf32> to vector<10x128xf32>
      %225 = arith.mulf %215, %224 : vector<10x128xf32>
      %226 = vector.broadcast %206 : vector<1x128xf32> to vector<10x128xf32>
      %227 = arith.mulf %225, %226 : vector<10x128xf32>
      %228 = vector.broadcast %209 : vector<1x128xf32> to vector<10x128xf32>
      %229 = arith.addf %227, %228 : vector<10x128xf32>
      %230 = arith.truncf %229 : vector<10x128xf32> to vector<10x128xbf16>
      %231 = arith.index_cast %arg22 : i32 to index
      %c0_83 = arith.constant 0 : index
      %c0_84 = arith.constant 0 : index
      %232 = vector.load %arg14[%231, %c0_83, %c0_84] : memref<2x128x512xbf16, #tpu.memory_space<vmem>>, vector<1x128x512xbf16>
      %233 = vector.shape_cast %232 : vector<1x128x512xbf16> to vector<128x512xbf16>
      %cst_85 = arith.constant dense<0.000000e+00> : vector<10x512xf32>
      %234 = tpu.matmul %230, %233, %cst_85 {dimension_numbers = #tpu.dot_dimension_numbers<[1], [0], [0], [1], [0, 0, 1, 1], [], []>} : vector<10x128xbf16>, vector<128x512xbf16>, vector<10x512xf32> -> vector<10x512xf32>
      %235 = arith.index_cast %arg22 : i32 to index
      %c0_86 = arith.constant 0 : index
      %c0_87 = arith.constant 0 : index
      %236 = vector.load %arg15[%235, %c0_86, %c0_87] : memref<2x1x512xf32, #tpu.memory_space<vmem>>, vector<1x1x512xf32>
      %237 = vector.shape_cast %236 : vector<1x1x512xf32> to vector<1x512xf32>
      %238 = vector.broadcast %237 : vector<1x512xf32> to vector<10x512xf32>
      %239 = arith.addf %234, %238 : vector<10x512xf32>
      %cst_88 = arith.constant 5.000000e-01 : f32
      %240 = vector.broadcast %cst_88 : f32 to vector<10x512xf32>
      %241 = arith.mulf %240, %239 : vector<10x512xf32>
      %cst_89 = arith.constant 0.707106769 : f32
      %242 = vector.broadcast %cst_89 : f32 to vector<10x512xf32>
      %243 = arith.mulf %239, %242 : vector<10x512xf32>
      %244 = math.absf %243 : vector<10x512xf32>
      %cst_90 = arith.constant 0.327591091 : f32
      %245 = vector.broadcast %cst_90 : f32 to vector<10x512xf32>
      %246 = arith.mulf %245, %244 : vector<10x512xf32>
      %cst_91 = arith.constant 1.000000e+00 : f32
      %247 = vector.broadcast %cst_91 : f32 to vector<10x512xf32>
      %248 = arith.addf %247, %246 : vector<10x512xf32>
      %cst_92 = arith.constant 1.000000e+00 : f32
      %249 = vector.broadcast %cst_92 : f32 to vector<10x512xf32>
      %250 = arith.divf %249, %248 : vector<10x512xf32>
      %cst_93 = arith.constant 1.06140542 : f32
      %251 = vector.broadcast %cst_93 : f32 to vector<10x512xf32>
      %252 = arith.mulf %251, %250 : vector<10x512xf32>
      %cst_94 = arith.constant -1.45315206 : f32
      %253 = vector.broadcast %cst_94 : f32 to vector<10x512xf32>
      %254 = arith.addf %252, %253 : vector<10x512xf32>
      %255 = arith.mulf %254, %250 : vector<10x512xf32>
      %cst_95 = arith.constant 1.42141378 : f32
      %256 = vector.broadcast %cst_95 : f32 to vector<10x512xf32>
      %257 = arith.addf %255, %256 : vector<10x512xf32>
      %258 = arith.mulf %257, %250 : vector<10x512xf32>
      %cst_96 = arith.constant -0.284496725 : f32
      %259 = vector.broadcast %cst_96 : f32 to vector<10x512xf32>
      %260 = arith.addf %258, %259 : vector<10x512xf32>
      %261 = arith.mulf %260, %250 : vector<10x512xf32>
      %cst_97 = arith.constant 0.254829586 : f32
      %262 = vector.broadcast %cst_97 : f32 to vector<10x512xf32>
      %263 = arith.addf %261, %262 : vector<10x512xf32>
      %264 = arith.mulf %263, %250 : vector<10x512xf32>
      %cst_98 = arith.constant 0.000000e+00 : f32
      %265 = vector.broadcast %cst_98 : f32 to vector<10x512xf32>
      %266 = arith.subf %265, %244 : vector<10x512xf32>
      %267 = arith.mulf %266, %244 : vector<10x512xf32>
      %268 = math.exp %267 : vector<10x512xf32>
      %269 = arith.mulf %264, %268 : vector<10x512xf32>
      %cst_99 = arith.constant 1.000000e+00 : f32
      %270 = vector.broadcast %cst_99 : f32 to vector<10x512xf32>
      %271 = arith.subf %270, %269 : vector<10x512xf32>
      %cst_100 = arith.constant 0.000000e+00 : f32
      %272 = vector.broadcast %cst_100 : f32 to vector<10x512xf32>
      %273 = arith.cmpf oge, %243, %272 : vector<10x512xf32>
      %cst_101 = arith.constant 0.000000e+00 : f32
      %274 = vector.broadcast %cst_101 : f32 to vector<10x512xf32>
      %275 = arith.subf %274, %271 : vector<10x512xf32>
      %276 = arith.select %273, %271, %275 : vector<10x512xi1>, vector<10x512xf32>
      %cst_102 = arith.constant 1.000000e+00 : f32
      %277 = vector.broadcast %cst_102 : f32 to vector<10x512xf32>
      %278 = arith.addf %277, %276 : vector<10x512xf32>
      %279 = arith.mulf %241, %278 : vector<10x512xf32>
      %280 = arith.truncf %279 : vector<10x512xf32> to vector<10x512xbf16>
      %281 = arith.index_cast %arg22 : i32 to index
      %c0_103 = arith.constant 0 : index
      %c0_104 = arith.constant 0 : index
      %282 = vector.load %arg16[%281, %c0_103, %c0_104] : memref<2x512x128xbf16, #tpu.memory_space<vmem>>, vector<1x512x128xbf16>
      %283 = vector.shape_cast %282 : vector<1x512x128xbf16> to vector<512x128xbf16>
      %cst_105 = arith.constant dense<0.000000e+00> : vector<10x128xf32>
      %284 = tpu.matmul %280, %283, %cst_105 {dimension_numbers = #tpu.dot_dimension_numbers<[1], [0], [0], [1], [0, 0, 1, 1], [], []>} : vector<10x512xbf16>, vector<512x128xbf16>, vector<10x128xf32> -> vector<10x128xf32>
      %285 = arith.index_cast %arg22 : i32 to index
      %c0_106 = arith.constant 0 : index
      %c0_107 = arith.constant 0 : index
      %286 = vector.load %arg17[%285, %c0_106, %c0_107] : memref<2x1x128xf32, #tpu.memory_space<vmem>>, vector<1x1x128xf32>
      %287 = vector.shape_cast %286 : vector<1x1x128xf32> to vector<1x128xf32>
      %288 = vector.broadcast %287 : vector<1x128xf32> to vector<10x128xf32>
      %289 = arith.addf %284, %288 : vector<10x128xf32>
      %290 = arith.addf %203, %289 : vector<10x128xf32>
      scf.yield %290 : vector<10x128xf32>
    }
    %c2_i32_18 = arith.constant 2 : i32
    %c0_19 = arith.constant 0 : index
    %c0_20 = arith.constant 0 : index
    %27 = vector.load %arg18[%c0_19, %c0_20] : memref<1x128xf32, #tpu.memory_space<vmem>>, vector<1x128xf32>
    %c0_21 = arith.constant 0 : index
    %c0_22 = arith.constant 0 : index
    %28 = vector.load %arg19[%c0_21, %c0_22] : memref<1x128xf32, #tpu.memory_space<vmem>>, vector<1x128xf32>
    %cst_23 = arith.constant dense<0.000000e+00> : vector<10xf32>
    %29 = vector.multi_reduction <add>, %26, %cst_23 [1] : vector<10x128xf32> to vector<10xf32>
    %30 = vector.shape_cast %29 : vector<10xf32> to vector<10x1xf32>
    %cst_24 = arith.constant 1.280000e+02 : f32
    %31 = vector.broadcast %cst_24 : f32 to vector<10x1xf32>
    %32 = arith.divf %30, %31 : vector<10x1xf32>
    %33 = vector.broadcast %32 : vector<10x1xf32> to vector<10x128xf32>
    %34 = arith.subf %26, %33 : vector<10x128xf32>
    %35 = arith.mulf %34, %34 : vector<10x128xf32>
    %cst_25 = arith.constant dense<0.000000e+00> : vector<10xf32>
    %36 = vector.multi_reduction <add>, %35, %cst_25 [1] : vector<10x128xf32> to vector<10xf32>
    %37 = vector.shape_cast %36 : vector<10xf32> to vector<10x1xf32>
    %cst_26 = arith.constant 1.280000e+02 : f32
    %38 = vector.broadcast %cst_26 : f32 to vector<10x1xf32>
    %39 = arith.divf %37, %38 : vector<10x1xf32>
    %cst_27 = arith.constant 9.99999997E-7 : f32
    %40 = vector.broadcast %cst_27 : f32 to vector<10x1xf32>
    %41 = arith.addf %39, %40 : vector<10x1xf32>
    %42 = math.rsqrt %41 : vector<10x1xf32>
    %43 = vector.broadcast %42 : vector<10x1xf32> to vector<10x128xf32>
    %44 = arith.mulf %34, %43 : vector<10x128xf32>
    %45 = vector.broadcast %27 : vector<1x128xf32> to vector<10x128xf32>
    %46 = arith.mulf %44, %45 : vector<10x128xf32>
    %47 = vector.broadcast %28 : vector<1x128xf32> to vector<10x128xf32>
    %48 = arith.addf %46, %47 : vector<10x128xf32>
    %49 = vector.extract_strided_slice %48 {offsets = [1, 0], sizes = [4, 128], strides = [1, 1]} : vector<10x128xf32> to vector<4x128xf32>
    %c0_28 = arith.constant 0 : index
    %c0_29 = arith.constant 0 : index
    %c0_30 = arith.constant 0 : index
    %50 = vector.load %arg20[%c0_28, %c0_29, %c0_30] : memref<2x4x128xf32, #tpu.memory_space<vmem>>, vector<1x4x128xf32>
    %51 = vector.shape_cast %50 : vector<1x4x128xf32> to vector<4x128xf32>
    %52 = vector.shape_cast %49 : vector<4x128xf32> to vector<1x4x128xf32>
    tpu.vector_store %arg20[%c0_28, %c0_29, %c0_30], %52 {strides = array<i32>} : memref<2x4x128xf32, #tpu.memory_space<vmem>>, vector<1x4x128xf32>,
    %53 = vector.extract_strided_slice %48 {offsets = [6, 0], sizes = [4, 128], strides = [1, 1]} : vector<10x128xf32> to vector<4x128xf32>
    %c1_31 = arith.constant 1 : index
    %c0_32 = arith.constant 0 : index
    %c0_33 = arith.constant 0 : index
    %54 = vector.load %arg20[%c1_31, %c0_32, %c0_33] : memref<2x4x128xf32, #tpu.memory_space<vmem>>, vector<1x4x128xf32>
    %55 = vector.shape_cast %54 : vector<1x4x128xf32> to vector<4x128xf32>
    %56 = vector.shape_cast %53 : vector<4x128xf32> to vector<1x4x128xf32>
    tpu.vector_store %arg20[%c1_31, %c0_32, %c0_33], %56 {strides = array<i32>} : memref<2x4x128xf32, #tpu.memory_space<vmem>>, vector<1x4x128xf32>,
    return
  }
}

</mosaic_0001>

<bundles_post_ra>
// kernel: timm_wrapper_forward.1
= control target key start
LH: loop header
LB: loop body
LE: loop exit
PB: predicated region body
PF: predicated region fallthrough
CT: control target
= control target key end

     0   :  { %s3666_s0 = inlined_call_operand.vmem [shape: f32[8,192], index: 0, kind: input, shape index: {}]   ;;  %s3667_s1 = inlined_call_operand.vmem [shape: bf16[192,128], index: 1, kind: input, shape index: {}]   ;;  %s3668_s2 = inlined_call_operand.vmem [shape: f32[1,128], index: 2, kind: input, shape index: {}]   ;;  %s3669_s3 = inlined_call_operand.vmem [shape: f32[1,128], index: 3, kind: input, shape index: {}]   ;;  %s3670_s4 = inlined_call_operand.vmem [shape: f32[5,128], index: 4, kind: input, shape index: {}]   ;;  %s3671_s5 = inlined_call_operand.vmem [shape: f32[10,10], index: 5, kind: input, shape index: {}]   ;;  %s3672_s6 = inlined_call_operand.vmem [shape: f32[2,1,128], index: 6, kind: input, shape index: {}]   ;;  %s3673_s7 = inlined_call_operand.vmem [shape: f32[2,1,128], index: 7, kind: input, shape index: {}]   ;;  %s3674_s8 = inlined_call_operand.hbm [shape: bf16[2,128,384], index: 8, kind: input, shape index: {}]   ;;  %s3675_s9 = inlined_call_operand.vmem [shape: f32[2,1,384], index: 9, kind: input, shape index: {}]   ;;  %s3676_s10 = inlined_call_operand.vmem [shape: bf16[2,128,128], index: 10, kind: input, shape index: {}]   ;;  %s3677_s11 = inlined_call_operand.vmem [shape: f32[2,1,128], index: 11, kind: input, shape index: {}]   ;;  %s3678_s12 = inlined_call_operand.vmem [shape: f32[2,1,128], index: 12, kind: input, shape index: {}]   ;;  %s3679_s13 = inlined_call_operand.vmem [shape: f32[2,1,128], index: 13, kind: input, shape index: {}]   ;;  %s3680_s14 = inlined_call_operand.vmem [shape: bf16[2,128,512], index: 14, kind: input, shape index: {}]   ;;  %s3681_s15 = inlined_call_operand.vmem [shape: f32[2,1,512], index: 15, kind: input, shape index: {}]   ;;  %s3682_s16 = inlined_call_operand.hbm [shape: bf16[2,512,128], index: 16, kind: input, shape index: {}]   ;;  %s3683_s17 = inlined_call_operand.vmem [shape: f32[2,1,128], index: 17, kind: input, shape index: {}]   ;;  %s3684_s18 = inlined_call_operand.vmem [shape: f32[1,128], index: 18, kind: input, shape index: {}]   ;;  %s3685_s19 = inlined_call_operand.vmem [shape: f32[1,128], index: 19, kind: input, shape index: {}]   ;;  %s3686_s20 = inlined_call_operand.hbm [shape: f32[2,4,128], index: 20, kind: output, shape index: {}]  }
   0x1   :  { %3689 = sst [smem:[#allocation12_spill]] %s3666_s0 }
   0x2   :  { %3690 = sst [smem:[#allocation13_spill]] %s3667_s1 }
   0x3   :  { %3691 = sst [smem:[#allocation14_spill]] %s3668_s2 }
   0x4   :  { %3692 = sst [smem:[#allocation15_spill]] %s3669_s3 }
   0x5   :  { %3693 = sst [smem:[#allocation16_spill]] %s3670_s4 }
   0x6   :  { %25 = vsyncpa [#allocation4], 0 }
   0x7   :  { %26 = vsyncpa [#allocation7], 0 }
   0x8   :  { %27 = vsyncpa [#allocation5], 0  ;;  %s48_s23 = sshll.u32 %s3674_s8, 4  ;;  %s2841_s24 = smov [#allocation3]   ;;  %s49_s23 = int_to_ptr.hbm [resolvable:$true] %s48_s23 }
   0x9   :  { %s50_s2 = sshll.u32 %s2841_s24, 4  ;;  %s75_s26 = sshll.u32 %s3682_s16, 4  ;;  %s51_s2 = int_to_ptr.vmem [resolvable:$true] %s50_s2  ;;  %s76_s26 = int_to_ptr.hbm [resolvable:$true] %s75_s26 }
   0xa   :  { %s2842_s27 = smov 192   ;;  %s2843_s28 = smov 12  }
   0xb   :  { %56 = dma.hbm_to_vmem [thread:$0]  %s49_s23, 6144, %s51_s2, [#allocation4], %s2842_s27, %s2842_s27, %s2843_s28  }
   0xc   :  { %s2844_s4 = smov [#allocation6]   ;;  %s2845_s30 = smov 64  }
   0xd   :  { %s77_s29 = sshll.u32 %s2844_s4, 4  ;;  %s2846_s0 = smov 4   ;;  %s78_s29 = int_to_ptr.vmem [resolvable:$true] %s77_s29 }
   0xe   :  { %83 = dma.hbm_to_vmem [thread:$0]  %s76_s26, 8192, %s78_s29, [#allocation7], %s2845_s30, %s2845_s30, %s2846_s0  }
   0xf   :  { %2823 = dma.done.wait [#allocation4], 6144  }
  0x10   :  { %2824 = vsyncadd [#allocation4], 4294961152 }
  0x11   :  { %2825 = dma.done.wait [#allocation7], 8192  }
  0x12   :  { %2826 = vsyncadd [#allocation7], 4294959104  ;;  %v2969_v0 = vld [vmem:[%s3671_s5] sm:$0xff]  ;;  %v2974_v1 = vld [vmem:[%s3671_s5 + $0x8] sm:$0x3]  ;;  %s3694_s24 = sld [smem:[#allocation13_spill]] }
  0x13   :  { %s3695_s25 = sld [smem:[#allocation12_spill]]  ;;  %vm203_vm0 = vcmask 523264  }
  0x14   :  { %s3696_s23 = sld [smem:[#allocation16_spill]] }
  0x15   :  { %s3697_s26 = sld [smem:[#allocation15_spill]] }
  0x16   :  { %s3698_s28 = sld [smem:[#allocation14_spill]] }
  0x18   :  { %v2512_v2 = vld [vmem:[%s3694_s24 + $0x38] sm:$0xff]  ;;  %v2511_v4 = vld [vmem:[%s3694_s24 + $0x30] sm:$0xff]  ;;  %v2510_v6 = vld [vmem:[%s3694_s24 + $0x28] sm:$0xff] }
  0x19   :  { %v2516_v3 = vld [vmem:[%s3694_s24 + $0x58] sm:$0xff]  ;;  %207 = vmatpush.bf16.msra.mxu0 %v2512_v2  ;;  %v2515_v5 = vld [vmem:[%s3694_s24 + $0x50] sm:$0xff]  ;;  %v2514_v7 = vld [vmem:[%s3694_s24 + $0x48] sm:$0xff] }
  0x1a   :  { %224 = vmatpush.bf16.msra.mxu1 %v2516_v3  ;;  %v2509_v8 = vld [vmem:[%s3694_s24 + $0x20] sm:$0xff]  ;;  %v100_v10 = vld [vmem:[%s3695_s25 + $0x8] sm:$0xff]  ;;  %v2508_v11 = vld [vmem:[%s3694_s24 + $0x18] sm:$0xff] }
  0x1b   :  { %v2513_v9 = vld [vmem:[%s3694_s24 + $0x40] sm:$0xff]  ;;  %v102_v12 = vpack.c.bf16 %v100_v10, %v100_v10  ;;  %v2507_v13 = vld [vmem:[%s3694_s24 + $0x10] sm:$0xff]  ;;  %v2506_v14 = vld [vmem:[%s3694_s24 + $0x8] sm:$0xff] }
  0x1c   :  { %v2505_v15 = vld [vmem:[%s3694_s24] sm:$0xff] }
  0x1d   :  { %208 = vmatpush.bf16.msra.mxu0 %v2511_v4  ;;  %v99_v16 = vld [vmem:[%s3695_s25] sm:$0xff]  ;;  %s3031_s25 = smov 0  }
  0x1e   :  { %225 = vmatpush.bf16.msra.mxu1 %v2515_v5  ;;  %v101_v17 = vpack.c.bf16 %v99_v16, %v99_v16  ;;  %v233_v18 = vld [vmem:[%s3696_s23] sm:$0x1f] }
  0x1f   :  { %v234_v19 = vld [vmem:[%s3697_s26] sm:$0x1]  ;;  %v238_v26 = vrot.slane %v233_v18, 1  ;;  %v243_v27 = vrot.slane %v233_v18, 5 }
  0x20   :  { %v235_v20 = vadd.f32 %v234_v19, %v233_v18  ;;  %v2652_v23 = vld [vmem:[%s3698_s28] ss:$0 sm:$0xff] }
  0x21   :  { %209 = vmatpush.bf16.msra.mxu0 %v2510_v6 }
  0x22   :  { %226 = vmatpush.bf16.msra.mxu1 %v2514_v7  ;;  %236 = vst [vmem:[#allocation2] sm:$0x1] %v235_v20 }
  0x23   :  { %242 = vst [vmem:[#allocation2 + $0x5] sm:$0x1] %v235_v20 }
  0x25   :  { %210 = vmatpush.bf16.msra.mxu0 %v2509_v8 }
  0x26   :  { %227 = vmatpush.bf16.msra.mxu1 %v2513_v9 }
  0x29   :  { %211 = vmatpush.bf16.msra.mxu0 %v2508_v11  ;;  %2101 = vmatmul.msk.bf16.vlgmr.msra.gmra.mxu1 %vm203_vm0, %v102_v12 }
  0x2d   :  { %212 = vmatpush.bf16.msra.mxu0 %v2507_v13 }
  0x31   :  { %213 = vmatpush.bf16.msra.mxu0 %v2506_v14 }
  0x35   :  { %214 = vmatpush.bf16.msra.mxu0 %v2505_v15 }
  0x38   :  { %215 = vmatmul.bf16.vlgmr.msra.gmra.mxu0 %v101_v17 }
  0xa6   :  { %v229_v21 = vpop.f32.mrf.mxu1 }
  0xae   :  { %v231_v22 = vpop.f32.mrf.mxu1 }
  0xb5   :  { %v216_v24 = vpop.f32.mrf.mxu0 }
  0xb6   :  { %v217_v25 = vadd.f32 %v2652_v23, %v216_v24 }
  0xb8   :  { %v230_v28 = vadd.f32 %v229_v21, %v217_v25 }
  0xba   :  { %v240_v29 = vadd.f32 %v238_v26, %v230_v28  ;;  %v245_v30 = vadd.f32 %v243_v27, %v230_v28 }
  0xbc   :  { %241 = vst [vmem:[#allocation2 + $0x1] sm:$0xf] %v240_v29 }
  0xbd   :  { %246 = vst [vmem:[#allocation2 + $0x2] sm:$0xf0] %v245_v30  ;;  %v218_v31 = vpop.f32.mrf.mxu0 }
  0xc4   :  { %v247_v32 = vld [vmem:[#allocation2] sm:$0xff]   ;;  %v248_v33 = vld [vmem:[#allocation2 + $0x8] sm:$0x3]  }
  0xc5 LB: > { %vm265_vm1 = vcmask 1041408   ;;  %v2847_v35 = vmov 128.0   ;;  %s259_s29 = scalar_lea.vmem %s3672_s6, %s2839_s25  ;;  %s261_s16 = scalar_lea.vmem %s3673_s7, %s2839_s25  ;;  %vm563_vm9 = vcmask 261120   ;;  %vm612_vm10 = vcmask 1044480   ;;  %s2839_s25 = sphi %s3031_s25, %s256_s25   ;;  %v2835_v32 = vphi %v247_v32, %v3700_v32   ;;  %v2831_v33 = vphi %v248_v33, %v3699_v33  }
  0xc6   : > { %v266_v34 = vsel %vm265_vm1, %v2831_v33, 0.0  ;;  %2659 = vrcp.f32 %v2847_v35  ;;  %s2517_s1 = smul.u32 192, %s2839_s25  ;;  %vm584_vm11 = vcmask 80896   ;;  %vm588_vm12 = vcmask 74752   ;;  %s2848_s4 = smov 96  }
  0xc7   : > { %267 = vadd.xlane.f32.xlu0 %v266_v34  ;;  %s359_s24 = smul.u32 3, %s2839_s25  ;;  %s2850_s8 = smov 32  }
  0xc8   : > { %s3069_s22 = scalar_lea.vmem [#allocation3], %s2517_s1  ;;  %s2542_s21 = sshll.u32 %s2839_s25, 6 }
  0xc9   : > { %v2189_v51 = vld [vmem:[%s3069_s22 + $0xa8] sm:$0xf]  ;;  %v2540_v52 = vld [vmem:[%s3069_s22 + $0xb0] sm:$0xf0]  ;;  %v2539_v53 = vld [vmem:[%s3069_s22 + $0xac] sm:$0xf]  ;;  %s360_s5 = scalar_lea.vmem %s3675_s9, %s359_s24  ;;  %s966_s3 = scalar_lea.vmem %s3677_s11, %s2839_s25 }
  0xca   : > { %v2190_v54 = vor.u32 %v2540_v52, %v2189_v51  ;;  %v2191_v55 = vld [vmem:[%s3069_s22 + $0xb4] sm:$0xf0]  ;;  %v2197_v56 = vld [vmem:[%s3069_s22 + $0xb0] sm:$0xf]  ;;  %v2541_v57 = vld [vmem:[%s3069_s22 + $0xb8] sm:$0xf0]  ;;  %s973_s27 = scalar_lea.vmem %s3678_s12, %s2839_s25 }
  0xcb   : > { %v2194_v58 = vor.u32 %v2539_v53, %v2191_v55  ;;  %v2198_v59 = vor.u32 %v2541_v57, %v2197_v56  ;;  %v2177_v60 = vld [vmem:[%s3069_s22 + $0x90] sm:$0xf]  ;;  %v2537_v61 = vld [vmem:[%s3069_s22 + $0x98] sm:$0xf0]  ;;  %v2536_v62 = vld [vmem:[%s3069_s22 + $0x94] sm:$0xf] }
  0xcc   : > { %v2660_v36 = vpop.eup %2659  ;;  %497 = vmatpush.bf16.msra.mxu0 %v2190_v54  ;;  %v2178_v63 = vor.u32 %v2537_v61, %v2177_v60  ;;  %v2179_v2 = vld [vmem:[%s3069_s22 + $0x9c] sm:$0xf0]  ;;  %v2185_v3 = vld [vmem:[%s3069_s22 + $0x98] sm:$0xf]  ;;  %v2538_v4 = vld [vmem:[%s3069_s22 + $0xa0] sm:$0xf0] }
  0xcd   : > { %v270_v37 = vmul.f32 128.0, %v2660_v36  ;;  %vm274_vm2 = vweird.f32 %v2660_v36  ;;  %511 = vmatpush.bf16.msra.mxu1 %v2194_v58  ;;  %525 = vmatpush.bf16.msra.mxu2 %v2198_v59  ;;  %v2182_v5 = vor.u32 %v2536_v62, %v2179_v2  ;;  %v2186_v6 = vor.u32 %v2538_v4, %v2185_v3  ;;  %v2165_v7 = vld [vmem:[%s3069_s22 + $0x78] sm:$0xf]  ;;  %v2534_v8 = vld [vmem:[%s3069_s22 + $0x80] sm:$0xf0] }
  0xce   : > { %v2533_v9 = vld [vmem:[%s3069_s22 + $0x7c] sm:$0xf]  ;;  %v2166_v10 = vor.u32 %v2534_v8, %v2165_v7  ;;  %v2167_v11 = vld [vmem:[%s3069_s22 + $0x84] sm:$0xf0]  ;;  %v2173_v12 = vld [vmem:[%s3069_s22 + $0x80] sm:$0xf] }
  0xcf   : > { %263 = vadd.xlane.f32.xlu0 %v2835_v32  ;;  %v271_v38 = vsub.f32 1.0, %v270_v37  ;;  %v2535_v13 = vld [vmem:[%s3069_s22 + $0x88] sm:$0xf0]  ;;  %v2170_v14 = vor.u32 %v2533_v9, %v2167_v11  ;;  %v2153_v16 = vld [vmem:[%s3069_s22 + $0x60] sm:$0xf] }
  0xd0   : > { %498 = vmatpush.bf16.msra.mxu0 %v2178_v63  ;;  %v2174_v15 = vor.u32 %v2535_v13, %v2173_v12  ;;  %v2531_v17 = vld [vmem:[%s3069_s22 + $0x68] sm:$0xf0]  ;;  %v2530_v18 = vld [vmem:[%s3069_s22 + $0x64] sm:$0xf]  ;;  %v2155_v20 = vld [vmem:[%s3069_s22 + $0x6c] sm:$0xf0] }
  0xd1   : > { %v272_v39 = vmul.f32 %v2660_v36, %v271_v38  ;;  %512 = vmatpush.bf16.msra.mxu1 %v2182_v5  ;;  %526 = vmatpush.bf16.msra.mxu2 %v2186_v6  ;;  %v2154_v19 = vor.u32 %v2531_v17, %v2153_v16  ;;  %v2161_v21 = vld [vmem:[%s3069_s22 + $0x68] sm:$0xf]  ;;  %v2532_v22 = vld [vmem:[%s3069_s22 + $0x70] sm:$0xf0]  ;;  %v2158_v23 = vor.u32 %v2530_v18, %v2155_v20  ;;  %v2527_v27 = vld [vmem:[%s3069_s22 + $0x4c] sm:$0xf] }
  0xd2   : > { %v2162_v24 = vor.u32 %v2532_v22, %v2161_v21  ;;  %v2141_v25 = vld [vmem:[%s3069_s22 + $0x48] sm:$0xf]  ;;  %v2528_v26 = vld [vmem:[%s3069_s22 + $0x50] sm:$0xf0]  ;;  %v2143_v29 = vld [vmem:[%s3069_s22 + $0x54] sm:$0xf0] }
  0xd3   : > { %v273_v41 = vadd.f32 %v2660_v36, %v272_v39  ;;  %v2142_v28 = vor.u32 %v2528_v26, %v2141_v25  ;;  %v2149_v30 = vld [vmem:[%s3069_s22 + $0x50] sm:$0xf]  ;;  %v2529_v31 = vld [vmem:[%s3069_s22 + $0x58] sm:$0xf0]  ;;  %v2146_v34 = vor.u32 %v2527_v27, %v2143_v29  ;;  %v2524_v38 = vld [vmem:[%s3069_s22 + $0x34] sm:$0xf] }
  0xd4   : > { %499 = vmatpush.bf16.msra.mxu0 %v2166_v10  ;;  %v2150_v35 = vor.u32 %v2529_v31, %v2149_v30  ;;  %v2525_v37 = vld [vmem:[%s3069_s22 + $0x38] sm:$0xf0]  ;;  %v2119_v52 = vld [vmem:[%s3069_s22 + $0x24] sm:$0xf0]  ;;  %v2125_v53 = vld [vmem:[%s3069_s22 + $0x20] sm:$0xf] }
  0xd5   : > { %v3045_v42 = vsel %vm274_vm2, %v2660_v36, %v273_v41  ;;  %513 = vmatpush.bf16.msra.mxu1 %v2170_v14  ;;  %527 = vmatpush.bf16.msra.mxu2 %v2174_v15  ;;  %v2129_v36 = vld [vmem:[%s3069_s22 + $0x30] sm:$0xf]  ;;  %v2137_v41 = vld [vmem:[%s3069_s22 + $0x38] sm:$0xf]  ;;  %v2523_v54 = vld [vmem:[%s3069_s22 + $0x28] sm:$0xf0] }
  0xd6   : > { %v2130_v39 = vor.u32 %v2525_v37, %v2129_v36  ;;  %v2126_v56 = vor.u32 %v2523_v54, %v2125_v53  ;;  %v2105_v57 = vld [vmem:[%s3069_s22] sm:$0xf]  ;;  %v2519_v58 = vld [vmem:[%s3069_s22 + $0x8] sm:$0xf0]  ;;  %v2518_v59 = vld [vmem:[%s3069_s22 + $0x4] sm:$0xf] }
  0xd7   : > { %v2106_v61 = vor.u32 %v2519_v58, %v2105_v57  ;;  %v2107_v62 = vld [vmem:[%s3069_s22 + $0xc] sm:$0xf0]  ;;  %v2113_v63 = vld [vmem:[%s3069_s22 + $0x8] sm:$0xf]  ;;  %v2520_v2 = vld [vmem:[%s3069_s22 + $0x10] sm:$0xf0] }
  0xd8   : > { %500 = vmatpush.bf16.msra.mxu0 %v2154_v19  ;;  %v2110_v4 = vor.u32 %v2518_v59, %v2107_v62  ;;  %v2114_v5 = vor.u32 %v2520_v2, %v2113_v63 }
  0xd9   : > { %514 = vmatpush.bf16.msra.mxu1 %v2158_v23  ;;  %528 = vmatpush.bf16.msra.mxu2 %v2162_v24  ;;  %v2653_v23 = vld [vmem:[%s259_s29] ss:$0 sm:$0xff]  ;;  %s2849_s29 = smov 64  }
  0xdc   : > { %501 = vmatpush.bf16.msra.mxu0 %v2142_v28  ;;  %v2654_v28 = vld [vmem:[%s261_s16] ss:$0 sm:$0xff] }
  0xdd   : > { %515 = vmatpush.bf16.msra.mxu1 %v2146_v34  ;;  %529 = vmatpush.bf16.msra.mxu2 %v2150_v35  ;;  %v361_v35 = vld [vmem:[%s360_s5] sm:$0x7] }
  0xde   : > { %v364_v36 = vperm.slane %v361_v35, 1 }
  0xe0   : > { %502 = vmatpush.bf16.msra.mxu0 %v2130_v39 }
 0x13a   : > { %v268_v40 = vpop.xlane.xlu0 %267 }
 0x13b   : > { %v277_v45 = vmul.f32 %v3045_v42, %v268_v40  ;;  %v2131_v40 = vld [vmem:[%s3069_s22 + $0x3c] sm:$0xf0] }
 0x13d   : > { %v3055_v48 = vsub.f32 %v2831_v33, %v277_v45 }
 0x13f   : > { %v281_v49 = vmul.f32 %v3055_v48, %v3055_v48 }
 0x141   : > { %v284_v50 = vsel %vm265_vm1, %v281_v49, 0.0  ;;  %v2522_v49 = vld [vmem:[%s3069_s22 + $0x20] sm:$0xf0] }
 0x142   : > { %v264_v43 = vpop.xlane.xlu0 %263 }
 0x143   : > { %v276_v44 = vmul.f32 %v3045_v42, %v264_v43  ;;  %v2526_v43 = vld [vmem:[%s3069_s22 + $0x40] sm:$0xf0] }
 0x144   : > { %v2138_v45 = vor.u32 %v2526_v43, %v2137_v41  ;;  %v363_v43 = vperm.slane %v361_v35, 0 }
 0x145   : > { %v3050_v46 = vsub.f32 %v2835_v32, %v276_v44  ;;  %v2134_v44 = vor.u32 %v2524_v38, %v2131_v40 }
 0x146   : > { %530 = vmatpush.bf16.msra.mxu2 %v2138_v45  ;;  %v365_v45 = vperm.slane %v361_v35, 2 }
 0x147   : > { %v280_v47 = vmul.f32 %v3050_v46, %v3050_v46  ;;  %516 = vmatpush.bf16.msra.mxu1 %v2134_v44 }
 0x149   : > { %282 = vadd.xlane.f32.xlu1 %v280_v47  ;;  %v2117_v47 = vld [vmem:[%s3069_s22 + $0x18] sm:$0xf] }
 0x14a   : > { %v2118_v51 = vor.u32 %v2522_v49, %v2117_v47  ;;  %531 = vmatpush.bf16.msra.mxu2 %v2126_v56 }
 0x14c   : > { %503 = vmatpush.bf16.msra.mxu0 %v2118_v51 }
 0x14e   : > { %532 = vmatpush.bf16.msra.mxu2 %v2114_v5 }
 0x150   : > { %504 = vmatpush.bf16.msra.mxu0 %v2106_v61 }
 0x151   : > { %285 = vadd.xlane.f32.xlu1 %v284_v50  ;;  %v2521_v50 = vld [vmem:[%s3069_s22 + $0x1c] sm:$0xf]  ;;  %s3160_s22 = scalar_lea.vmem %s3676_s10, %s2542_s21 }
 0x152   : > { %v2122_v55 = vor.u32 %v2521_v50, %v2119_v52 }
 0x154   : > { %517 = vmatpush.bf16.msra.mxu1 %v2122_v55 }
 0x158   : > { %518 = vmatpush.bf16.msra.mxu1 %v2110_v4 }
 0x1bc   : > { %v283_v60 = vpop.xlane.xlu1 %282 }
 0x1bd   : > { %v287_v3 = vmul.f32 %v283_v60, %v3045_v42 }
 0x1bf   : > { %v289_v6 = vadd.f32 1e-06, %v287_v3 }
 0x1c1   : > { %2661 = vrsqrt.f32 %v289_v6  ;;  %vm297_vm4 = vweird.f32 %v289_v6 }
 0x1c4   : > { %v286_v7 = vpop.xlane.xlu1 %285 }
 0x1c5   : > { %v288_v8 = vmul.f32 %v286_v7, %v3045_v42 }
 0x1c7   : > { %v2662_v9 = vpop.eup %2661  ;;  %v290_v10 = vadd.f32 1e-06, %v288_v8 }
 0x1c8   : > { %v292_v11 = vmul.f32 %v2662_v9, %v289_v6  ;;  %vm298_vm3 = vweird.f32 %v2662_v9 }
 0x1c9   : > { %2663 = vrsqrt.f32 %v290_v10  ;;  %vm299_vm5 = vmor %vm297_vm4, %vm298_vm3  ;;  %vm307_vm7 = vweird.f32 %v290_v10 }
 0x1ca   : > { %v293_v12 = vmul.f32 %v2662_v9, %v292_v11 }
 0x1cc   : > { %v294_v13 = vmul.f32 0.5, %v293_v12 }
 0x1ce   : > { %v295_v14 = vsub.f32 1.5, %v294_v13 }
 0x1cf   : > { %v2664_v15 = vpop.eup %2663 }
 0x1d0   : > { %v296_v16 = vmul.f32 %v2662_v9, %v295_v14  ;;  %v302_v17 = vmul.f32 %v2664_v15, %v290_v10  ;;  %vm308_vm6 = vweird.f32 %v2664_v15 }
 0x1d1   : > { %vm309_vm8 = vmor %vm307_vm7, %vm308_vm6 }
 0x1d2   : > { %v303_v18 = vmul.f32 %v2664_v15, %v302_v17  ;;  %v300_v19 = vsel %vm299_vm5, %v2662_v9, %v296_v16  ;;  %v2543_v16 = vld [vmem:[%s3160_s22] sm:$0xff] }
 0x1d3   : > { %v311_v22 = vmul.f32 %v300_v19, %v3050_v46 }
 0x1d4   : > { %v304_v20 = vmul.f32 0.5, %v303_v18 }
 0x1d5   : > { %v316_v27 = vmul.f32 %v2653_v23, %v311_v22 }
 0x1d6   : > { %v305_v21 = vsub.f32 1.5, %v304_v20 }
 0x1d7   : > { %v321_v46 = vadd.f32 %v2654_v28, %v316_v27 }
 0x1d8   : > { %v306_v24 = vmul.f32 %v2664_v15, %v305_v21 }
 0x1da   : > { %v310_v25 = vsel %vm309_vm8, %v2664_v15, %v306_v24  ;;  %v2544_v15 = vld [vmem:[%s3160_s22 + $0x8] sm:$0xff] }
 0x1db   : > { %v312_v26 = vmul.f32 %v310_v25, %v3055_v48  ;;  %754 = vmatpush.bf16.msrb.mxu2 %v2544_v15 }
 0x1dd   : > { %v317_v29 = vmul.f32 %v2653_v23, %v312_v26 }
 0x1df   : > { %v322_v30 = vadd.f32 %v2654_v28, %v317_v29  ;;  %755 = vmatpush.bf16.msrb.mxu2 %v2543_v16 }
 0x1e1   : > { %v323_v31 = vpack.c.bf16 %v322_v30, %v321_v46 }
 0x1e3   : > { %505 = vmatmul.bf16.vlgmr.msra.gmra.mxu0 %v323_v31  ;;  %519 = vmatmul.bf16.vlgmr.msra.gmra.mxu1 %v323_v31 }
 0x1e4   : > { %533 = vmatmul.bf16.vlgmr.msra.gmra.mxu2 %v323_v31 }
 0x260   : > { %v506_v34 = vpop.f32.mrf.mxu0  ;;  %v520_v48 = vpop.f32.mrf.mxu1 }
 0x261   : > { %v521_v39 = vadd.f32 %v520_v48, %v364_v36  ;;  %v507_v50 = vadd.f32 %v506_v34, %v363_v43 }
 0x263   : > { %v539_v55 = vmul.f32 0.17677669, %v507_v50 }
 0x267   : > { %v534_v37 = vpop.f32.mrf.mxu2 }
 0x268   : > { %v522_v38 = vpop.f32.mrf.mxu1  ;;  %v508_v40 = vpop.f32.mrf.mxu0  ;;  %v535_v52 = vadd.f32 %v534_v37, %v365_v45 }
 0x269   : > { %v523_v41 = vadd.f32 %v522_v38, %v364_v36  ;;  %v509_v47 = vadd.f32 %v508_v40, %v363_v43 }
 0x26b   : > { %v561_v44 = vpack.c.bf16 %v523_v41, %v521_v39  ;;  %v540_v53 = vmul.f32 0.17677669, %v509_v47 }
 0x26d   : > { %v568_v49 = vsel %vm563_vm9, %v561_v44, 0  ;;  %v560_v57 = vpack.c.bf16 %v540_v53, %v539_v55 }
 0x26e   : > { %577 = vmatpush.bf16.xpose.msra.mxu3 %v568_v49 }
 0x26f   : > { %v536_v51 = vpop.f32.mrf.mxu2 }
 0x270   : > { %v537_v54 = vadd.f32 %v536_v51, %v365_v45 }
 0x272   : > { %v3138_v56 = vpack.c.bf16 %v537_v54, %v535_v52 }
 0x274   : > { %v614_v58 = vsel %vm612_vm10, %v3138_v56, 0 }
 0x275   : > { %2201 = vmatmul.msk.bf16.vlgmr.msra.gmra.mxu3 %vm563_vm9, %v560_v57 }
 0x276   : > { %623 = vmatpush.bf16.msrb.mxu3 %v614_v58 }
 0x2f8   : > { %v579_v59 = vpop.f32.mrf.mxu3 }
 0x2f9   : > { %v580_v60 = vadd.f32 %v579_v59, %v2969_v0 }
 0x2fb   : > { %v585_v61 = vsel %vm584_vm11, %v580_v60, -inf }
 0x2fc   : > { %586 = vmax.xlane.f32.xlu2 %v585_v61 }
 0x300   : > { %v581_v62 = vpop.f32.mrf.mxu3 }
 0x301   : > { %v582_v63 = vadd.f32 %v581_v62, %v2974_v1 }
 0x303   : > { %v589_v2 = vsel %vm588_vm12, %v582_v63, -inf }
 0x304   : > { %590 = vmax.xlane.f32.xlu2 %v589_v2 }
 0x31c   : > { %635 = vrot.lane.b32.xlu2 %v561_v44, %s2848_s4 }
 0x324   : > { %764 = vrot.lane.b32.xlu2 %v561_v44, %s2849_s29 }
 0x32c   : > { %762 = vrot.lane.b32.xlu2 %v560_v57, %s2849_s29 }
 0x36f   : > { %v587_v3 = vpop.xlane.xlu2 %586 }
 0x370   : > { %v592_v4 = vsub.f32 %v580_v60, %v587_v3 }
 0x372   : > { %v594_v5 = vmul.f32 1.442695, %v592_v4 }
 0x374   : > { %2665 = vpow2.f32 %v594_v5 }
 0x377   : > { %v591_v6 = vpop.xlane.xlu2 %590 }
 0x378   : > { %v593_v7 = vsub.f32 %v582_v63, %v591_v6 }
 0x37a   : > { %v2666_v8 = vpop.eup %2665  ;;  %v596_v9 = vmul.f32 1.442695, %v593_v7 }
 0x37b   : > { %v598_v10 = vsel %vm584_vm11, %v2666_v8, 0.0 }
 0x37c   : > { %2667 = vpow2.f32 %v596_v9  ;;  %599 = vadd.xlane.f32.xlu0 %v598_v10 }
 0x37f   : > { %v636_v11 = vpop.permute.xlu2 %635 }
 0x380   : > { %v641_v12 = vsel %vm563_vm9, %v636_v11, 0 }
 0x381   : > { %650 = vmatpush.bf16.xpose.msra.mxu3 %v641_v12 }
 0x382   : > { %v2668_v13 = vpop.eup %2667 }
 0x383   : > { %v601_v14 = vsel %vm588_vm12, %v2668_v13, 0.0 }
 0x384   : > { %602 = vadd.xlane.f32.xlu1 %v601_v14 }
 0x387   : > { %v765_v23 = vpop.permute.xlu2 %764 }
 0x388   : > { %v770_v25 = vsel %vm563_vm9, %v765_v23, 0 }
 0x38f   : > { %v763_v29 = vpop.permute.xlu2 %762 }
 0x390   : > { %632 = vrot.lane.b32.xlu0 %v560_v57, %s2848_s4 }
 0x398   : > { %863 = vrot.lane.b32.xlu0 %v560_v57, %s2850_s8 }
 0x39d   : > { %865 = vrot.lane.b32.xlu1 %v561_v44, %s2850_s8 }
 0x3ef   : > { %v600_v17 = vpop.xlane.xlu0 %599 }
 0x3f0   : > { %2669 = vrcp.f32 %v600_v17 }
 0x3f6   : > { %v2670_v19 = vpop.eup %2669 }
 0x3f7   : > { %v603_v18 = vpop.xlane.xlu1 %602  ;;  %v606_v21 = vmul.f32 %v2670_v19, %v2666_v8 }
 0x3f8   : > { %2671 = vrcp.f32 %v603_v18 }
 0x3fe   : > { %v2672_v20 = vpop.eup %2671 }
 0x3ff   : > { %v607_v22 = vmul.f32 %v2672_v20, %v2668_v13 }
 0x401   : > { %v608_v24 = vpack.c.bf16 %v607_v22, %v606_v21 }
 0x402   : > { %v633_v28 = vpop.permute.xlu0 %632 }
 0x403   : > { %2202 = vmatmul.msk.bf16.vlgmr.msrb.gmra.mxu3 %vm584_vm11, %v608_v24 }
 0x404   : > { %779 = vmatpush.bf16.xpose.msrb.mxu3 %v770_v25 }
 0x40a   : > { %v864_v38 = vpop.permute.xlu0 %863 }
 0x40f   : > { %v866_v26 = vpop.permute.xlu1 %865 }
 0x410   : > { %v871_v27 = vsel %vm563_vm9, %v866_v26, 0 }
 0x411   : > { %880 = vmatpush.bf16.xpose.msra.mxu2 %v871_v27 }
 0x413   : > { %2203 = vmatmul.msk.bf16.vlgmr.msra.gmra.mxu3 %vm563_vm9, %v633_v28 }
 0x423   : > { %2223 = vmatmul.msk.bf16.vlgmr.msrb.gmra.mxu3 %vm563_vm9, %v763_v29 }
 0x486   : > { %v625_v46 = vpop.f32.mrf.mxu3 }
 0x48e   : > { %v627_v30 = vpop.f32.mrf.mxu3 }
 0x48f   : > { %v630_v31 = vpack.c.bf16 %v627_v30, %v625_v46 }
 0x491   : > { %2222 = vmatmul.msk.bf16.vlgmr.msrb.gmra.mxu2 %vm563_vm9, %v630_v31 }
 0x496   : > { %v652_v34 = vpop.f32.mrf.mxu3 }
 0x497   : > { %v653_v48 = vadd.f32 %v652_v34, %v2969_v0 }
 0x499   : > { %v657_v35 = vsel %vm584_vm11, %v653_v48, -inf }
 0x49a   : > { %658 = vmax.xlane.f32.xlu1 %v657_v35  ;;  %v2546_v35 = vld [vmem:[%s3160_s22 + $0x18] sm:$0xff] }
 0x49b   : > { %725 = vmatpush.bf16.msrb.mxu1 %v2546_v35 }
 0x49e   : > { %v654_v36 = vpop.f32.mrf.mxu3 }
 0x49f   : > { %v655_v37 = vadd.f32 %v654_v36, %v2974_v1  ;;  %v2545_v36 = vld [vmem:[%s3160_s22 + $0x10] sm:$0xff] }
 0x4a0   : > { %726 = vmatpush.bf16.msrb.mxu1 %v2545_v36 }
 0x4a1   : > { %2234 = vmatmul.msk.bf16.vlgmr.msra.gmra.mxu2 %vm563_vm9, %v864_v38  ;;  %v660_v39 = vsel %vm588_vm12, %v655_v37, -inf }
 0x4a2   : > { %661 = vmax.xlane.f32.xlu0 %v660_v39 }
 0x4a6   : > { %v781_v40 = vpop.f32.mrf.mxu3 }
 0x4a7   : > { %v782_v41 = vadd.f32 %v781_v40, %v2969_v0 }
 0x4a9   : > { %v786_v43 = vsel %vm584_vm11, %v782_v41, -inf }
 0x4aa   : > { %787 = vmax.xlane.f32.xlu0 %v786_v43 }
 0x4ae   : > { %v783_v59 = vpop.f32.mrf.mxu3 }
 0x4af   : > { %v784_v61 = vadd.f32 %v783_v59, %v2974_v1 }
 0x4b1   : > { %v789_v5 = vsel %vm588_vm12, %v784_v61, -inf }
 0x50d   : > { %v659_v53 = vpop.xlane.xlu1 %658 }
 0x50e   : > { %v663_v57 = vsub.f32 %v653_v48, %v659_v53 }
 0x510   : > { %v665_v60 = vmul.f32 1.442695, %v663_v57 }
 0x514   : > { %v3177_v44 = vpop.f32.mrf.mxu2 }
 0x515   : > { %v662_v45 = vpop.xlane.xlu0 %661 }
 0x516   : > { %v664_v47 = vsub.f32 %v655_v37, %v662_v45 }
 0x518   : > { %v667_v49 = vmul.f32 1.442695, %v664_v47 }
 0x51a   : > { %2673 = vpow2.f32 %v667_v49 }
 0x51b   : > { %2675 = vpow2.f32 %v665_v60 }
 0x51c   : > { %v3179_v50 = vpop.f32.mrf.mxu2 }
 0x51d   : > { %v788_v62 = vpop.xlane.xlu0 %787 }
 0x51e   : > { %v792_v3 = vsub.f32 %v782_v41, %v788_v62 }
 0x520   : > { %v2674_v51 = vpop.eup %2673  ;;  %v794_v6 = vmul.f32 1.442695, %v792_v3  ;;  %v2548_v3 = vld [vmem:[%s3160_s22 + $0x28] sm:$0xff] }
 0x521   : > { %v672_v52 = vsel %vm588_vm12, %v2674_v51, 0.0  ;;  %v2676_v7 = vpop.eup %2675  ;;  %853 = vmatpush.bf16.msra.mxu1 %v2548_v3 }
 0x522   : > { %673 = vadd.xlane.f32.xlu0 %v672_v52  ;;  %2677 = vpow2.f32 %v794_v6  ;;  %v669_v8 = vsel %vm584_vm11, %v2676_v7, 0.0 }
 0x524   : > { %v882_v54 = vpop.f32.mrf.mxu2 }
 0x525   : > { %v883_v55 = vadd.f32 %v882_v54, %v2969_v0 }
 0x527   : > { %v887_v58 = vsel %vm584_vm11, %v883_v55, -inf }
 0x528   : > { %888 = vmax.xlane.f32.xlu2 %v887_v58  ;;  %v3189_v9 = vpop.eup %2677 }
 0x529   : > { %v798_v10 = vsel %vm584_vm11, %v3189_v9, 0.0 }
 0x52c   : > { %v884_v63 = vpop.f32.mrf.mxu2 }
 0x52d   : > { %v885_v2 = vadd.f32 %v884_v63, %v2974_v1  ;;  %v2550_v63 = vld [vmem:[%s3160_s22 + $0x38] sm:$0xff] }
 0x52f   : > { %v890_v4 = vsel %vm588_vm12, %v885_v2, -inf }
 0x530   : > { %891 = vmax.xlane.f32.xlu1 %v890_v4  ;;  %790 = vmax.xlane.f32.xlu2 %v789_v5  ;;  %v2547_v4 = vld [vmem:[%s3160_s22 + $0x20] sm:$0xff] }
 0x531   : > { %854 = vmatpush.bf16.msra.mxu1 %v2547_v4 }
 0x538   : > { %670 = vadd.xlane.f32.xlu1 %v669_v8 }
 0x540   : > { %799 = vadd.xlane.f32.xlu1 %v798_v10 }
 0x548   : > { %681 = vrot.lane.b32.xlu2 %v3138_v56, %s2848_s4  ;;  %s975_s4 = scalar_lea.vmem %s3679_s13, %s2839_s25 }
 0x595   : > { %v674_v19 = vpop.xlane.xlu0 %673 }
 0x59b   : > { %v889_v11 = vpop.xlane.xlu2 %888 }
 0x59c   : > { %v893_v12 = vsub.f32 %v883_v55, %v889_v11 }
 0x59e   : > { %v895_v13 = vmul.f32 1.442695, %v893_v12 }
 0x5a0   : > { %2679 = vpow2.f32 %v895_v13 }
 0x5a3   : > { %v892_v14 = vpop.xlane.xlu1 %891  ;;  %v791_v15 = vpop.xlane.xlu2 %790 }
 0x5a4   : > { %v793_v16 = vsub.f32 %v784_v61, %v791_v15  ;;  %v894_v20 = vsub.f32 %v885_v2, %v892_v14  ;;  %v2549_v2 = vld [vmem:[%s3160_s22 + $0x30] sm:$0xff] }
 0x5a6   : > { %v2680_v17 = vpop.eup %2679  ;;  %v796_v18 = vmul.f32 1.442695, %v793_v16  ;;  %v897_v22 = vmul.f32 1.442695, %v894_v20 }
 0x5a7   : > { %v899_v21 = vsel %vm584_vm11, %v2680_v17, 0.0 }
 0x5a8   : > { %900 = vadd.xlane.f32.xlu1 %v899_v21  ;;  %2681 = vpow2.f32 %v796_v18  ;;  %v2655_v18 = vld [vmem:[%s966_s3] ss:$0 sm:$0xff]  ;;  %s2247_s3 = sshll.u32 %s2839_s25, 2 }
 0x5a9   : > { %2683 = vrcp.f32 %v674_v19 }
 0x5ab   : > { %v671_v23 = vpop.xlane.xlu1 %670  ;;  %v682_v24 = vpop.permute.xlu2 %681 }
 0x5ac   : > { %2685 = vrcp.f32 %v671_v23  ;;  %v687_v25 = vsel %vm612_vm10, %v682_v24, 0 }
 0x5ad   : > { %696 = vmatpush.bf16.msrb.mxu0 %v687_v25  ;;  %2687 = vpow2.f32 %v897_v22 }
 0x5ae   : > { %v2682_v26 = vpop.eup %2681 }
 0x5af   : > { %v2684_v27 = vpop.eup %2683  ;;  %v801_v28 = vsel %vm588_vm12, %v2682_v26, 0.0 }
 0x5b0   : > { %802 = vadd.xlane.f32.xlu0 %v801_v28  ;;  %v678_v46 = vmul.f32 %v2684_v27, %v2674_v51 }
 0x5b2   : > { %v2686_v29 = vpop.eup %2685 }
 0x5b3   : > { %v677_v30 = vmul.f32 %v2686_v29, %v2676_v7  ;;  %v2688_v31 = vpop.eup %2687  ;;  %v800_v37 = vpop.xlane.xlu1 %799 }
 0x5b4   : > { %v902_v48 = vsel %vm588_vm12, %v2688_v31, 0.0 }
 0x5b5   : > { %v679_v34 = vpack.c.bf16 %v678_v46, %v677_v30 }
 0x5b7   : > { %2204 = vmatmul.msk.bf16.vlgmr.msrb.gmra.mxu0 %vm584_vm11, %v679_v34 }
 0x5b8   : > { %903 = vadd.xlane.f32.xlu0 %v902_v48 }
 0x5c1   : > { %910 = vrot.lane.b32.xlu1 %v3138_v56, %s2850_s8  ;;  %s1066_s8 = scalar_lea.vmem %s3681_s15, %s2247_s3 }
 0x5cc   : > { %809 = vrot.lane.b32.xlu0 %v3138_v56, %s2849_s29  ;;  %s2551_s29 = sshll.u32 %s2839_s25, 8 }
 0x5cd   : > { %s3260_s16 = scalar_lea.vmem %s3680_s14, %s2551_s29 }
 0x5ce   : > { %v2362_v48 = vld [vmem:[%s3260_s16 + $0xe0] sm:$0xf]  ;;  %v2582_v35 = vld [vmem:[%s3260_s16 + $0xec] sm:$0xf0]  ;;  %v2580_v36 = vld [vmem:[%s3260_s16 + $0xe4] sm:$0xf] }
 0x5cf   : > { %v2572_v3 = vld [vmem:[%s3260_s16 + $0xa4] sm:$0xf] }
 0x61b   : > { %v901_v39 = vpop.xlane.xlu1 %900 }
 0x61c   : > { %2689 = vrcp.f32 %v901_v39  ;;  %v2370_v39 = vld [vmem:[%s3260_s16 + $0xe8] sm:$0xf] }
 0x622   : > { %v2690_v41 = vpop.eup %2689 }
 0x623   : > { %v803_v38 = vpop.xlane.xlu0 %802  ;;  %v907_v47 = vmul.f32 %v2690_v41, %v2680_v17 }
 0x62b   : > { %v904_v40 = vpop.xlane.xlu0 %903 }
 0x62c   : > { %2691 = vrcp.f32 %v904_v40  ;;  %v2583_v40 = vld [vmem:[%s3260_s16 + $0xf4] sm:$0xf0] }
 0x62d   : > { %2693 = vrcp.f32 %v803_v38  ;;  %v2364_v38 = vld [vmem:[%s3260_s16 + $0xf0] sm:$0xf0] }
 0x62e   : > { %2695 = vrcp.f32 %v800_v37  ;;  %v2363_v37 = vor.u32 %v2582_v35, %v2362_v48  ;;  %v2367_v41 = vor.u32 %v2580_v36, %v2364_v38  ;;  %v2565_v48 = vld [vmem:[%s3260_s16 + $0x6c] sm:$0xf]  ;;  %v2308_v35 = vld [vmem:[%s3260_s16 + $0x78] sm:$0xf0]  ;;  %v2562_v38 = vld [vmem:[%s3260_s16 + $0x4c] sm:$0xf0] }
 0x62f   : > { %v2311_v36 = vor.u32 %v2565_v48, %v2308_v35  ;;  %v2656_v35 = vld [vmem:[%s973_s27] ss:$0 sm:$0xff]  ;;  %s1683_s27 = scalar_lea.vmem %s3683_s17, %s2839_s25  ;;  %s256_s25 = sadd.s32 1, %s2839_s25  }
 0x630   : > { %1251 = vmatpush.bf16.msrb.mxu2 %v2367_v41  ;;  %v2284_v41 = vld [vmem:[%s3260_s16 + $0x50] sm:$0xf0]  ;;  %p253_p0 = scmp.ge.s32.totalorder %s256_s25, 2  }
 0x631   :  { %s2851_s11 = smov (%p253_p0), [#allocation8]   ;;  %s2010_s15 = sshll.u32 (%p253_p0), %s3686_s20, 4  ;;  %s2011_s15 = int_to_ptr.hbm [resolvable:$true] %s2010_s15 }
 0x632   : > { %v2692_v43 = vpop.eup %2691  ;;  %s2008_s12 = sshll.u32 (%p253_p0), %s2851_s11, 4  ;;  %s2009_s12 = int_to_ptr.vmem [resolvable:$true] %s2008_s12 }
 0x633   : > { %v911_v45 = vpop.permute.xlu1 %910  ;;  %v908_v49 = vmul.f32 %v2692_v43, %v2688_v31  ;;  %v2694_v53 = vpop.eup %2693  ;;  %v2371_v43 = vor.u32 %v2583_v40, %v2370_v39  ;;  %v2560_v39 = vld [vmem:[%s3260_s16 + $0x44] sm:$0xf] }
 0x634   : > { %v916_v51 = vsel %vm612_vm10, %v911_v45, 0  ;;  %v698_v52 = vpop.f32.mrf.mxu0  ;;  %v2696_v55 = vpop.eup %2695  ;;  %v807_v58 = vmul.f32 %v2694_v53, %v2682_v26  ;;  %v2581_v45 = vld [vmem:[%s3260_s16 + $0xec] sm:$0xf] }
 0x635   : > { %925 = vmatpush.bf16.msra.mxu3 %v916_v51  ;;  %v909_v56 = vpack.c.bf16 %v908_v49, %v907_v47  ;;  %v806_v60 = vmul.f32 %v2696_v55, %v3189_v9  ;;  %v2372_v47 = vld [vmem:[%s3260_s16 + $0xf8] sm:$0xf0]  ;;  %v2346_v51 = vld [vmem:[%s3260_s16 + $0xc0] sm:$0xf]  ;;  %v2354_v55 = vld [vmem:[%s3260_s16 + $0xc8] sm:$0xf] }
 0x636   : > { %v2375_v49 = vor.u32 %v2581_v45, %v2372_v47  ;;  %v2563_v45 = vld [vmem:[%s3260_s16 + $0x54] sm:$0xf0]  ;;  %v2287_v47 = vor.u32 %v2560_v39, %v2284_v41 }
 0x637   : > { %v808_v62 = vpack.c.bf16 %v807_v58, %v806_v60  ;;  %v2577_v60 = vld [vmem:[%s3260_s16 + $0xcc] sm:$0xf] }
 0x638   : > { %2235 = vmatmul.msk.bf16.vlgmr.msra.gmra.mxu3 %vm584_vm11, %v909_v56  ;;  %v2576_v56 = vld [vmem:[%s3260_s16 + $0xc4] sm:$0xf] }
 0x639   : > { %1265 = vmatpush.bf16.msrb.mxu3 %v2371_v43  ;;  %v2290_v43 = vld [vmem:[%s3260_s16 + $0x48] sm:$0xf] }
 0x63c   : > { %v700_v54 = vpop.f32.mrf.mxu0 }
 0x63d   : > { %v703_v57 = vpack.c.bf16 %v700_v54, %v698_v52  ;;  %v2578_v52 = vld [vmem:[%s3260_s16 + $0xcc] sm:$0xf0]  ;;  %v2348_v54 = vld [vmem:[%s3260_s16 + $0xd0] sm:$0xf0] }
 0x63e   : > { %v810_v59 = vpop.permute.xlu0 %809  ;;  %v2347_v53 = vor.u32 %v2578_v52, %v2346_v51  ;;  %v2351_v58 = vor.u32 %v2576_v56, %v2348_v54  ;;  %v2561_v51 = vld [vmem:[%s3260_s16 + $0x4c] sm:$0xf]  ;;  %v2292_v52 = vld [vmem:[%s3260_s16 + $0x58] sm:$0xf0]  ;;  %v2558_v54 = vld [vmem:[%s3260_s16 + $0x2c] sm:$0xf0] }
 0x63f   : > { %2213 = vmatmul.msk.bf16.vlgmr.msrb.gmra.mxu1 %vm563_vm9, %v703_v57  ;;  %v815_v61 = vsel %vm612_vm10, %v810_v59, 0  ;;  %v2579_v57 = vld [vmem:[%s3260_s16 + $0xd4] sm:$0xf0]  ;;  %v2295_v56 = vor.u32 %v2561_v51, %v2292_v52 }
 0x640   : > { %824 = vmatpush.bf16.msra.mxu0 %v815_v61  ;;  %1237 = vmatpush.bf16.msrb.mxu1 %v2363_v37  ;;  %v2355_v59 = vor.u32 %v2579_v57, %v2354_v55  ;;  %v2356_v61 = vld [vmem:[%s3260_s16 + $0xd8] sm:$0xf0]  ;;  %v2282_v37 = vld [vmem:[%s3260_s16 + $0x40] sm:$0xf]  ;;  %v2556_v55 = vld [vmem:[%s3260_s16 + $0x24] sm:$0xf] }
 0x641   : > { %1252 = vmatpush.bf16.msrb.mxu2 %v2351_v58  ;;  %v2283_v40 = vor.u32 %v2562_v38, %v2282_v37 }
 0x642   : > { %1266 = vmatpush.bf16.msrb.mxu3 %v2355_v59  ;;  %v2268_v59 = vld [vmem:[%s3260_s16 + $0x30] sm:$0xf0] }
 0x643   : > { %2224 = vmatmul.msk.bf16.vlgmr.msra.gmra.mxu0 %vm584_vm11, %v808_v62  ;;  %v2359_v62 = vor.u32 %v2577_v60, %v2356_v61  ;;  %v2274_v60 = vld [vmem:[%s3260_s16 + $0x28] sm:$0xf]  ;;  %v2559_v61 = vld [vmem:[%s3260_s16 + $0x34] sm:$0xf0] }
 0x644   : > { %954 = vmatpush.bf16.msrb.mxu0 %v2550_v63  ;;  %1238 = vmatpush.bf16.msrb.mxu1 %v2347_v53  ;;  %v2330_v63 = vld [vmem:[%s3260_s16 + $0xa0] sm:$0xf] }
 0x645   : > { %v2266_v53 = vld [vmem:[%s3260_s16 + $0x20] sm:$0xf] }
 0x646   : > { %v2267_v58 = vor.u32 %v2558_v54, %v2266_v53 }
 0x648   : > { %955 = vmatpush.bf16.msrb.mxu0 %v2549_v2  ;;  %v2574_v2 = vld [vmem:[%s3260_s16 + $0xac] sm:$0xf0] }
 0x649   : > { %v2331_v4 = vor.u32 %v2574_v2, %v2330_v63  ;;  %v2271_v63 = vor.u32 %v2556_v55, %v2268_v59  ;;  %v2275_v2 = vor.u32 %v2559_v61, %v2274_v60 }
 0x64b   : > { %1239 = vmatpush.bf16.msrb.mxu1 %v2331_v4  ;;  %v2276_v4 = vld [vmem:[%s3260_s16 + $0x38] sm:$0xf0] }
 0x64c   : > { %1279 = vmatpush.bf16.msra.mxu0 %v2375_v49  ;;  %v2291_v49 = vor.u32 %v2563_v45, %v2290_v43 }
 0x650   : > { %1280 = vmatpush.bf16.msra.mxu0 %v2359_v62 }
 0x6bb   : > { %v927_v5 = vpop.f32.mrf.mxu3 }
 0x6bc   : > { %v728_v11 = vpop.f32.mrf.mxu1 }
 0x6bd   : > { %v758_v13 = vadd.f32 %v3177_v44, %v728_v11  ;;  %v2340_v11 = vld [vmem:[%s3260_s16 + $0xb8] sm:$0xf0] }
 0x6c0   : > { %v826_v6 = vpop.f32.mrf.mxu0 }
 0x6c3   : > { %v929_v7 = vpop.f32.mrf.mxu3 }
 0x6c4   : > { %v932_v8 = vpack.c.bf16 %v929_v7, %v927_v5  ;;  %v730_v12 = vpop.f32.mrf.mxu1  ;;  %v2332_v5 = vld [vmem:[%s3260_s16 + $0xb0] sm:$0xf0]  ;;  %v2575_v7 = vld [vmem:[%s3260_s16 + $0xb4] sm:$0xf0] }
 0x6c5   : > { %v760_v20 = vadd.f32 %v3179_v50, %v730_v12 }
 0x6c6   : > { %2244 = vmatmul.msk.bf16.vlgmr.msrb.gmra.mxu0 %vm563_vm9, %v932_v8  ;;  %v2335_v8 = vor.u32 %v2572_v3, %v2332_v5  ;;  %v2557_v3 = vld [vmem:[%s3260_s16 + $0x2c] sm:$0xf]  ;;  %v2250_v5 = vld [vmem:[%s3260_s16] sm:$0xf] }
 0x6c8   : > { %v828_v9 = vpop.f32.mrf.mxu0  ;;  %1253 = vmatpush.bf16.msrb.mxu2 %v2335_v8  ;;  %v2552_v8 = vld [vmem:[%s3260_s16 + $0x4] sm:$0xf] }
 0x6c9   : > { %v831_v10 = vpack.c.bf16 %v828_v9, %v826_v6  ;;  %v2338_v6 = vld [vmem:[%s3260_s16 + $0xa8] sm:$0xf] }
 0x6ca   : > { %v2339_v9 = vor.u32 %v2575_v7, %v2338_v6  ;;  %v2279_v6 = vor.u32 %v2557_v3, %v2276_v4  ;;  %v2554_v7 = vld [vmem:[%s3260_s16 + $0xc] sm:$0xf0] }
 0x6cb   : > { %2233 = vmatmul.msk.bf16.vlgmr.msra.gmra.mxu1 %vm563_vm9, %v831_v10  ;;  %v2573_v10 = vld [vmem:[%s3260_s16 + $0xac] sm:$0xf] }
 0x6cc   : > { %v2343_v12 = vor.u32 %v2573_v10, %v2340_v11  ;;  %1267 = vmatpush.bf16.msrb.mxu3 %v2339_v9  ;;  %v2252_v9 = vld [vmem:[%s3260_s16 + $0x10] sm:$0xf0]  ;;  %v2251_v11 = vor.u32 %v2554_v7, %v2250_v5 }
 0x6ce   : > { %1281 = vmatpush.bf16.msra.mxu0 %v2343_v12  ;;  %v2255_v12 = vor.u32 %v2552_v8, %v2252_v9 }
 0x743   : > { %v957_v14 = vpop.f32.mrf.mxu0 }
 0x748   : > { %v856_v15 = vpop.f32.mrf.mxu1 }
 0x749   : > { %v861_v16 = vadd.f32 %v856_v15, %v758_v13  ;;  %v2314_v13 = vld [vmem:[%s3260_s16 + $0x80] sm:$0xf]  ;;  %v2568_v15 = vld [vmem:[%s3260_s16 + $0x84] sm:$0xf] }
 0x74b   : > { %v962_v17 = vadd.f32 %v957_v14, %v861_v16  ;;  %v959_v24 = vpop.f32.mrf.mxu0  ;;  %v2570_v14 = vld [vmem:[%s3260_s16 + $0x8c] sm:$0xf0] }
 0x74c   : > { %v2315_v16 = vor.u32 %v2570_v14, %v2314_v13  ;;  %v2258_v13 = vld [vmem:[%s3260_s16 + $0x8] sm:$0xf]  ;;  %v2555_v14 = vld [vmem:[%s3260_s16 + $0x14] sm:$0xf0] }
 0x74d   : > { %v964_v19 = vadd.f32 %v2835_v32, %v962_v17  ;;  %v2316_v17 = vld [vmem:[%s3260_s16 + $0x90] sm:$0xf0] }
 0x74e   : > { %1240 = vmatpush.bf16.msrb.mxu1 %v2315_v16  ;;  %v2553_v16 = vld [vmem:[%s3260_s16 + $0xc] sm:$0xf] }
 0x74f   : > { %v3225_v21 = vadd.f32 %v2655_v18, %v964_v19  ;;  %v2571_v19 = vld [vmem:[%s3260_s16 + $0x94] sm:$0xf0] }
 0x750   : > { %v858_v22 = vpop.f32.mrf.mxu1 }
 0x751   : > { %v862_v23 = vadd.f32 %v858_v22, %v760_v20  ;;  %977 = vadd.xlane.f32.xlu0 %v3225_v21  ;;  %v2319_v20 = vor.u32 %v2568_v15, %v2316_v17  ;;  %v2259_v15 = vor.u32 %v2555_v14, %v2258_v13  ;;  %v2260_v17 = vld [vmem:[%s3260_s16 + $0x18] sm:$0xf0] }
 0x753   : > { %v963_v25 = vadd.f32 %v959_v24, %v862_v23  ;;  %v2569_v23 = vld [vmem:[%s3260_s16 + $0x8c] sm:$0xf]  ;;  %v2324_v24 = vld [vmem:[%s3260_s16 + $0x98] sm:$0xf0]  ;;  %1254 = vmatpush.bf16.msrb.mxu2 %v2319_v20 }
 0x755   : > { %v965_v44 = vadd.f32 %v2831_v33, %v963_v25  ;;  %v2327_v25 = vor.u32 %v2569_v23, %v2324_v24 }
 0x757   : > { %v3229_v26 = vadd.f32 %v2655_v18, %v965_v44  ;;  %v2322_v18 = vld [vmem:[%s3260_s16 + $0x88] sm:$0xf]  ;;  %v2298_v44 = vld [vmem:[%s3260_s16 + $0x60] sm:$0xf]  ;;  %1282 = vmatpush.bf16.msra.mxu0 %v2327_v25 }
 0x758   : > { %v2323_v22 = vor.u32 %v2571_v19, %v2322_v18  ;;  %v2263_v18 = vor.u32 %v2553_v16, %v2260_v17 }
 0x759   : > { %v979_v32 = vsel %vm265_vm1, %v3229_v26, 0.0 }
 0x75a   : > { %980 = vadd.xlane.f32.xlu2 %v979_v32  ;;  %1268 = vmatpush.bf16.msrb.mxu3 %v2323_v22  ;;  %v2566_v32 = vld [vmem:[%s3260_s16 + $0x6c] sm:$0xf0] }
 0x75b   : > { %1283 = vmatpush.bf16.msra.mxu0 %v2311_v36 }
 0x75f   : > { %1284 = vmatpush.bf16.msra.mxu0 %v2295_v56 }
 0x763   : > { %1285 = vmatpush.bf16.msra.mxu0 %v2279_v6 }
 0x767   : > { %1286 = vmatpush.bf16.msra.mxu0 %v2263_v18 }
 0x7c4   : > { %v978_v50 = vpop.xlane.xlu0 %977 }
 0x7c5   : > { %v982_v27 = vmul.f32 %v978_v50, %v3045_v42  ;;  %v2564_v50 = vld [vmem:[%s3260_s16 + $0x64] sm:$0xf] }
 0x7c7   : > { %v3235_v28 = vsub.f32 %v3225_v21, %v982_v27  ;;  %v2299_v27 = vor.u32 %v2566_v32, %v2298_v44 }
 0x7c9   : > { %v986_v29 = vmul.f32 %v3235_v28, %v3235_v28  ;;  %1241 = vmatpush.bf16.msrb.mxu1 %v2299_v27 }
 0x7cb   : > { %988 = vadd.xlane.f32.xlu1 %v986_v29  ;;  %v2300_v29 = vld [vmem:[%s3260_s16 + $0x70] sm:$0xf0] }
 0x7cd   : > { %v981_v33 = vpop.xlane.xlu2 %980  ;;  %1242 = vmatpush.bf16.msrb.mxu1 %v2283_v40  ;;  %v2657_v40 = vld [vmem:[%s975_s4] ss:$0 sm:$0xff]  ;;  %s3480_s4 = scalar_lea.vmem [#allocation6], %s2551_s29 }
 0x7ce   : > { %v983_v46 = vmul.f32 %v981_v33, %v3045_v42  ;;  %v2306_v33 = vld [vmem:[%s3260_s16 + $0x68] sm:$0xf] }
 0x7d0   : > { %v3241_v30 = vsub.f32 %v3229_v26, %v983_v46  ;;  %v2567_v46 = vld [vmem:[%s3260_s16 + $0x74] sm:$0xf0] }
 0x7d1   : > { %1243 = vmatpush.bf16.msrb.mxu1 %v2267_v58 }
 0x7d2   : > { %v987_v31 = vmul.f32 %v3241_v30, %v3241_v30 }
 0x7d4   : > { %v990_v34 = vsel %vm265_vm1, %v987_v31, 0.0  ;;  %v2303_v31 = vor.u32 %v2564_v50, %v2300_v29 }
 0x7d5   : > { %991 = vadd.xlane.f32.xlu2 %v990_v34  ;;  %v2307_v34 = vor.u32 %v2567_v46, %v2306_v33  ;;  %1244 = vmatpush.bf16.msrb.mxu1 %v2251_v11 }
 0x7d6   : > { %1255 = vmatpush.bf16.msrb.mxu2 %v2303_v31 }
 0x7d7   : > { %1269 = vmatpush.bf16.msrb.mxu3 %v2307_v34 }
 0x7da   : > { %1256 = vmatpush.bf16.msrb.mxu2 %v2287_v47 }
 0x7db   : > { %1270 = vmatpush.bf16.msrb.mxu3 %v2291_v49 }
 0x7de   : > { %1257 = vmatpush.bf16.msrb.mxu2 %v2271_v63 }
 0x7df   : > { %1271 = vmatpush.bf16.msrb.mxu3 %v2275_v2 }
 0x7e2   : > { %1258 = vmatpush.bf16.msrb.mxu2 %v2255_v12 }
 0x7e3   : > { %1272 = vmatpush.bf16.msrb.mxu3 %v2259_v15 }
 0x83e   : > { %v989_v57 = vpop.xlane.xlu1 %988 }
 0x83f   : > { %v993_v62 = vmul.f32 %v989_v57, %v3045_v42 }
 0x841   : > { %v995_v10 = vadd.f32 1e-06, %v993_v62 }
 0x843   : > { %2697 = vrsqrt.f32 %v995_v10  ;;  %vm1003_vm14 = vweird.f32 %v995_v10 }
 0x848   : > { %v992_v19 = vpop.xlane.xlu2 %991 }
 0x849   : > { %v2698_v20 = vpop.eup %2697  ;;  %v994_v22 = vmul.f32 %v992_v19, %v3045_v42 }
 0x84a   : > { %v998_v23 = vmul.f32 %v2698_v20, %v995_v10  ;;  %vm1004_vm13 = vweird.f32 %v2698_v20 }
 0x84b   : > { %v996_v24 = vadd.f32 1e-06, %v994_v22  ;;  %vm1005_vm15 = vmor %vm1003_vm14, %vm1004_vm13 }
 0x84c   : > { %v999_v25 = vmul.f32 %v2698_v20, %v998_v23 }
 0x84d   : > { %2699 = vrsqrt.f32 %v996_v24  ;;  %vm1013_vm2 = vweird.f32 %v996_v24 }
 0x84e   : > { %v1000_v44 = vmul.f32 0.5, %v999_v25 }
 0x850   : > { %v1001_v32 = vsub.f32 1.5, %v1000_v44 }
 0x852   : > { %v1002_v27 = vmul.f32 %v2698_v20, %v1001_v32 }
 0x853   : > { %v2700_v50 = vpop.eup %2699 }
 0x854   : > { %v1008_v29 = vmul.f32 %v2700_v50, %v996_v24  ;;  %v1006_v46 = vsel %vm1005_vm15, %v2698_v20, %v1002_v27  ;;  %vm1014_vm0 = vweird.f32 %v2700_v50 }
 0x855   : > { %v1017_v48 = vmul.f32 %v1006_v46, %v3235_v28  ;;  %vm1015_vm3 = vmor %vm1013_vm2, %vm1014_vm0 }
 0x856   : > { %v1009_v33 = vmul.f32 %v2700_v50, %v1008_v29 }
 0x857   : > { %v1022_v39 = vmul.f32 %v2656_v35, %v1017_v48 }
 0x858   : > { %v1010_v31 = vmul.f32 0.5, %v1009_v33 }
 0x859   : > { %v1027_v41 = vadd.f32 %v2657_v40, %v1022_v39 }
 0x85a   : > { %v1011_v34 = vsub.f32 1.5, %v1010_v31 }
 0x85c   : > { %v1012_v36 = vmul.f32 %v2700_v50, %v1011_v34 }
 0x85e   : > { %v1016_v37 = vsel %vm1015_vm3, %v2700_v50, %v1012_v36 }
 0x85f   : > { %v1018_v38 = vmul.f32 %v1016_v37, %v3241_v30  ;;  %v3348_v30 = vld [vmem:[%s1066_s8] sm:$0xf] }
 0x860   : > { %v1069_v47 = vperm.slane %v3348_v30, 0  ;;  %v1072_v49 = vperm.slane %v3348_v30, 3  ;;  %v1070_v55 = vperm.slane %v3348_v30, 1  ;;  %v1071_v58 = vperm.slane %v3348_v30, 2 }
 0x861   : > { %v1023_v28 = vmul.f32 %v2656_v35, %v1018_v38 }
 0x863   : > { %v1028_v43 = vadd.f32 %v2657_v40, %v1023_v28 }
 0x865   : > { %v1029_v45 = vpack.c.bf16 %v1028_v43, %v1027_v41 }
 0x867   : > { %1245 = vmatmul.bf16.vlgmr.msrb.gmra.mxu1 %v1029_v45  ;;  %1259 = vmatmul.bf16.vlgmr.msrb.gmra.mxu2 %v1029_v45 }
 0x868   : > { %1273 = vmatmul.bf16.vlgmr.msrb.gmra.mxu3 %v1029_v45  ;;  %1287 = vmatmul.bf16.vlgmr.msra.gmra.mxu0 %v1029_v45 }
 0x8e4   : > { %v1246_v51 = vpop.f32.mrf.mxu1 }
 0x8e5   : > { %v3352_v52 = vadd.f32 %v1246_v51, %v1069_v47  ;;  %v1288_v56 = vpop.f32.mrf.mxu0 }
 0x8e6   : > { %v3354_v53 = vadd.f32 %v1288_v56, %v1072_v49 }
 0x8e7   : > { %v3357_v54 = vmul.f32 0.70710677, %v3352_v52 }
 0x8e8   : > { %v3361_v57 = vmul.f32 0.70710677, %v3354_v53 }
 0x8e9   : > { %v3365_v59 = vand.u32 2147483647, %v3357_v54 }
 0x8ea   : > { %v3368_v60 = vand.u32 2147483647, %v3361_v57  ;;  %v1260_v61 = vpop.f32.mrf.mxu2 }
 0x8eb   : > { %v1317_v62 = vmul.f32 0.3275911, %v3365_v59  ;;  %v3373_v63 = vadd.f32 %v1260_v61, %v1070_v55  ;;  %v1274_v2 = vpop.f32.mrf.mxu3 }
 0x8ec   : > { %v1320_v3 = vmul.f32 0.3275911, %v3368_v60  ;;  %v3378_v4 = vadd.f32 %v1274_v2, %v1071_v58  ;;  %v1248_v17 = vpop.f32.mrf.mxu1 }
 0x8ed   : > { %v1325_v5 = vadd.f32 1.0, %v1317_v62  ;;  %v3381_v7 = vmul.f32 0.70710677, %v3373_v63  ;;  %v1290_v20 = vpop.f32.mrf.mxu0  ;;  %v3400_v44 = vadd.f32 %v1248_v17, %v1069_v47 }
 0x8ee   : > { %v1328_v6 = vadd.f32 1.0, %v1320_v3  ;;  %v3384_v8 = vmul.f32 0.70710677, %v3378_v4  ;;  %v3402_v27 = vadd.f32 %v1290_v20, %v1072_v49 }
 0x8ef   : > { %2701 = vrcp.f32 %v1325_v5  ;;  %v3387_v9 = vand.u32 2147483647, %v3381_v7  ;;  %v1342_v23 = vand.u32 2147483647, %v1325_v5  ;;  %v1344_v24 = vand.u32 2147483648, %v1325_v5 }
 0x8f0   : > { %2703 = vrcp.f32 %v1328_v6  ;;  %v3390_v10 = vand.u32 2147483647, %v3384_v8  ;;  %v1389_v50 = vand.u32 2147483648, %v1328_v6  ;;  %v1387_v33 = vand.u32 2147483647, %v1328_v6 }
 0x8f1   : > { %v1318_v11 = vmul.f32 0.3275911, %v3387_v9  ;;  %vm1338_vm6 = vweird.f32 %v1325_v5  ;;  %v1345_v31 = vor.u32 1.1754944e-38, %v1344_v24  ;;  %vm1383_vm8 = vweird.f32 %v1328_v6 }
 0x8f2   : > { %v1319_v13 = vmul.f32 0.3275911, %v3390_v10  ;;  %v3405_v48 = vmul.f32 0.70710677, %v3400_v44  ;;  %vm1343_vm9 = vcmp.eq.f32.partialorder %v1342_v23, 8.507059e+37  ;;  %v1390_v37 = vor.u32 1.1754944e-38, %v1389_v50 }
 0x8f3   : > { %v3394_v16 = vadd.f32 1.0, %v1318_v11  ;;  %v3408_v38 = vmul.f32 0.70710677, %v3402_v27  ;;  %vm1388_vm11 = vcmp.eq.f32.partialorder %v1387_v33, 8.507059e+37 }
 0x8f4   : > { %v3396_v19 = vadd.f32 1.0, %v1319_v13  ;;  %v3422_v56 = vand.u32 2147483647, %v3405_v48 }
 0x8f5   : > { %v2702_v12 = vpop.eup %2701  ;;  %2705 = vrcp.f32 %v3394_v16  ;;  %v3425_v2 = vand.u32 2147483647, %v3408_v38  ;;  %v1359_v17 = vand.u32 2147483648, %v3394_v16  ;;  %vm1353_vm13 = vweird.f32 %v3394_v16 }
 0x8f6   : > { %v2704_v14 = vpop.eup %2703  ;;  %v1334_v15 = vmul.f32 %v2702_v12, %v1325_v5  ;;  %2707 = vrcp.f32 %v3396_v19  ;;  %vm1339_vm4 = vweird.f32 %v2702_v12  ;;  %vm1368_vm2 = vweird.f32 %v3396_v19 }
 0x8f7   : > { %v1379_v18 = vmul.f32 %v2704_v14, %v1328_v6  ;;  %vm1384_vm5 = vweird.f32 %v2704_v14  ;;  %vm1340_vm7 = vmor %vm1338_vm6, %vm1339_vm4  ;;  %v1321_v6 = vmul.f32 0.3275911, %v3422_v56  ;;  %v1324_v13 = vmul.f32 0.3275911, %v3425_v2 }
 0x8f8   : > { %v1335_v22 = vsub.f32 1.0, %v1334_v15  ;;  %vm1385_vm10 = vmor %vm1383_vm8, %vm1384_vm5  ;;  %v1357_v15 = vand.u32 2147483647, %v3394_v16 }
 0x8f9   : > { %v1380_v25 = vsub.f32 1.0, %v1379_v18  ;;  %v3433_v18 = vadd.f32 1.0, %v1321_v6  ;;  %v3438_v23 = vadd.f32 1.0, %v1324_v13 }
 0x8fa   : > { %v1336_v32 = vmul.f32 %v2702_v12, %v1335_v22  ;;  %vm1358_vm15 = vcmp.eq.f32.partialorder %v1357_v15, 8.507059e+37 }
 0x8fb   : > { %v1381_v29 = vmul.f32 %v2704_v14, %v1380_v25  ;;  %v2706_v35 = vpop.eup %2705  ;;  %v1528_v25 = vsub.f32 0.0, %v3368_v60  ;;  %2709 = vrcp.f32 %v3433_v18  ;;  %vm1398_vm6 = vweird.f32 %v3433_v18 }
 0x8fc   : > { %v1337_v46 = vadd.f32 %v2702_v12, %v1336_v32  ;;  %v3410_v39 = vpop.eup %2707  ;;  %v1349_v41 = vmul.f32 %v2706_v35, %v3394_v16  ;;  %vm1354_vm12 = vweird.f32 %v2706_v35  ;;  %2711 = vrcp.f32 %v3438_v23 }
 0x8fd   : > { %v1382_v34 = vadd.f32 %v2704_v14, %v1381_v29  ;;  %v1364_v47 = vmul.f32 %v3410_v39, %v3396_v19  ;;  %vm1355_vm14 = vmor %vm1353_vm13, %vm1354_vm12  ;;  %v1360_v29 = vor.u32 1.1754944e-38, %v1359_v17  ;;  %vm1369_vm0 = vweird.f32 %v3410_v39 }
 0x8fe   : > { %v1341_v36 = vsel %vm1340_vm7, %v2702_v12, %v1337_v46  ;;  %v1350_v51 = vsub.f32 1.0, %v1349_v41  ;;  %v1525_v12 = vsub.f32 0.0, %v3365_v59  ;;  %vm1370_vm3 = vmor %vm1368_vm2, %vm1369_vm0  ;;  %vm1573_vm13 = vcmp.ge.f32.partialorder %v3357_v54, 0.0 }
 0x8ff   : > { %v3412_v40 = vsel %vm1343_vm9, %v1345_v31, %v1341_v36  ;;  %v1386_v28 = vsel %vm1385_vm10, %v2704_v14, %v1382_v34  ;;  %v1365_v62 = vsub.f32 1.0, %v1364_v47  ;;  %v1536_v31 = vmul.f32 %v1528_v25, %v3368_v60 }
 0x900   : > { %v1453_v43 = vmul.f32 1.0614054, %v3412_v40  ;;  %v3416_v45 = vsel %vm1388_vm11, %v1390_v37, %v1386_v28  ;;  %v1351_v5 = vmul.f32 %v2706_v35, %v1350_v51  ;;  %v1533_v32 = vmul.f32 %v1525_v12, %v3365_v59 }
 0x901   : > { %v1456_v49 = vmul.f32 1.0614054, %v3416_v45  ;;  %v1366_v22 = vmul.f32 %v3410_v39, %v1365_v62  ;;  %v1374_v36 = vand.u32 2147483648, %v3396_v19  ;;  %v1372_v59 = vand.u32 2147483647, %v3396_v19  ;;  %v2710_v28 = vpop.eup %2709 }
 0x902   : > { %v1461_v61 = vadd.f32 -1.4531521, %v1453_v43  ;;  %v1352_v14 = vadd.f32 %v2706_v35, %v1351_v5  ;;  %v1541_v37 = vmul.f32 1.442695, %v1533_v32  ;;  %v1394_v60 = vmul.f32 %v2710_v28, %v3433_v18 }
 0x903   : > { %v1464_v3 = vadd.f32 -1.4531521, %v1456_v49  ;;  %v1367_v46 = vadd.f32 %v3410_v39, %v1366_v22  ;;  %v1547_v51 = vmul.f32 1.442695, %v1536_v31  ;;  %vm1373_vm4 = vcmp.eq.f32.partialorder %v1372_v59, 8.507059e+37 }
 0x904   : > { %v1469_v11 = vmul.f32 %v1461_v61, %v3412_v40  ;;  %v1356_v50 = vsel %vm1355_vm14, %v2706_v35, %v1352_v14  ;;  %v1262_v35 = vpop.f32.mrf.mxu2  ;;  %v1375_v61 = vor.u32 1.1754944e-38, %v1374_v36  ;;  %2713 = vpow2.f32 %v1541_v37 }
 0x905   : > { %v1472_v20 = vmul.f32 %v1464_v3, %v3416_v45  ;;  %v3448_v34 = vsel %vm1358_vm15, %v1360_v29, %v1356_v50  ;;  %v1371_v47 = vsel %vm1370_vm3, %v3410_v39, %v1367_v46  ;;  %v3459_v62 = vadd.f32 %v1262_v35, %v1070_v55  ;;  %v2712_v3 = vpop.eup %2711  ;;  %v2616_v46 = vld [vmem:[%s3480_s4 + $0xf8] sm:$0xff] }
 0x906   : > { %v1477_v24 = vadd.f32 1.4214138, %v1469_v11  ;;  %v1454_v43 = vmul.f32 1.0614054, %v3448_v34  ;;  %v1395_v19 = vsub.f32 1.0, %v1394_v60  ;;  %v1404_v5 = vand.u32 2147483648, %v3433_v18  ;;  %1922 = vmatpush.bf16.msrb.mxu0 %v2616_v46 }
 0x907   : > { %v1480_v33 = vadd.f32 1.4214138, %v1472_v20  ;;  %v3462_v6 = vsel %vm1373_vm4, %v1375_v61, %v1371_v47  ;;  %v1402_v11 = vand.u32 2147483647, %v3433_v18  ;;  %v1529_v39 = vsub.f32 0.0, %v3422_v56  ;;  %v2592_v18 = vld [vmem:[%s3480_s4 + $0x38] sm:$0xff] }
 0x908   : > { %v1485_v16 = vmul.f32 %v1477_v24, %v3412_v40  ;;  %v1439_v12 = vmul.f32 %v2712_v3, %v3438_v23  ;;  %v1462_v14 = vadd.f32 -1.4531521, %v1454_v43  ;;  %v1396_v15 = vmul.f32 %v2710_v28, %v1395_v19  ;;  %1880 = vmatpush.bf16.msra.mxu1 %v2592_v18  ;;  %v2591_v19 = vld [vmem:[%s3480_s4 + $0x30] sm:$0xff]  ;;  %v2614_v18 = vld [vmem:[%s3480_s4 + $0xe8] sm:$0xff] }
 0x909   : > { %v1488_v41 = vmul.f32 %v1480_v33, %v3416_v45  ;;  %vm1399_vm5 = vweird.f32 %v2710_v28  ;;  %v3470_v20 = vmul.f32 0.70710677, %v3459_v62  ;;  %v1455_v22 = vmul.f32 1.0614054, %v3462_v6 }
 0x90a   : > { %v1493_v49 = vadd.f32 -0.28449672, %v1485_v16  ;;  %v1440_v17 = vsub.f32 1.0, %v1439_v12  ;;  %v1397_v24 = vadd.f32 %v2710_v28, %v1396_v15  ;;  %v1405_v25 = vor.u32 1.1754944e-38, %v1404_v5  ;;  %vm1400_vm7 = vmor %vm1398_vm6, %vm1399_vm5  ;;  %v2714_v16 = vpop.eup %2713 }
 0x90b   : > { %v1496_v13 = vadd.f32 -0.28449672, %v1488_v41  ;;  %v1449_v32 = vand.u32 2147483648, %v3438_v23  ;;  %vm1444_vm8 = vweird.f32 %v2712_v3  ;;  %v1447_v29 = vand.u32 2147483647, %v3438_v23 }
 0x90c   : > { %v1501_v55 = vmul.f32 %v1493_v49, %v3412_v40  ;;  %v1441_v50 = vmul.f32 %v2712_v3, %v1440_v17  ;;  %v3476_v33 = vand.u32 2147483647, %v3470_v20  ;;  %v1470_v36 = vmul.f32 %v1462_v14, %v3448_v34  ;;  %v1276_v14 = vpop.f32.mrf.mxu3  ;;  %1881 = vmatpush.bf16.msra.mxu1 %v2591_v19  ;;  %v2600_v17 = vld [vmem:[%s3480_s4 + $0x78] sm:$0xff]  ;;  %v2613_v19 = vld [vmem:[%s3480_s4 + $0xe0] sm:$0xff] }
 0x90d   : > { %v1504_v31 = vmul.f32 %v1496_v13, %v3416_v45  ;;  %v1401_v37 = vsel %vm1400_vm7, %v2710_v28, %v1397_v24  ;;  %vm1403_vm9 = vcmp.eq.f32.partialorder %v1402_v11, 8.507059e+37  ;;  %vm1443_vm10 = vweird.f32 %v3438_v23  ;;  %v2615_v23 = vld [vmem:[%s3480_s4 + $0xf0] sm:$0xff]  ;;  %v2608_v24 = vld [vmem:[%s3480_s4 + $0xb8] sm:$0xff]  ;;  %1894 = vmatpush.bf16.msra.mxu2 %v2600_v17 }
 0x90e   : > { %v1509_v59 = vadd.f32 0.2548296, %v1501_v55  ;;  %v3486_v35 = vsel %vm1403_vm9, %v1405_v25, %v1401_v37  ;;  %v1442_v41 = vadd.f32 %v2712_v3, %v1441_v50  ;;  %v1526_v43 = vsub.f32 0.0, %v3387_v9  ;;  %vm1445_vm11 = vmor %vm1443_vm10, %vm1444_vm8  ;;  %1923 = vmatpush.bf16.msrb.mxu0 %v2615_v23  ;;  %1908 = vmatpush.bf16.msra.mxu3 %v2608_v24  ;;  %v2599_v37 = vld [vmem:[%s3480_s4 + $0x70] sm:$0xff] }
 0x90f   : > { %v1457_v47 = vmul.f32 1.0614054, %v3486_v35  ;;  %v1450_v60 = vor.u32 1.1754944e-38, %v1449_v32  ;;  %v1322_v28 = vmul.f32 0.3275911, %v3476_v33  ;;  %2715 = vpow2.f32 %v1547_v51 }
 0x910   : > { %v1446_v49 = vsel %vm1445_vm11, %v2712_v3, %v1442_v41  ;;  %vm1448_vm12 = vcmp.eq.f32.partialorder %v1447_v29, 8.507059e+37  ;;  %v1532_v61 = vsub.f32 0.0, %v3425_v2  ;;  %v1512_v5 = vadd.f32 0.2548296, %v1504_v31 }
 0x911   : > { %v1478_v11 = vadd.f32 1.4214138, %v1470_v36  ;;  %v1465_v12 = vadd.f32 -1.4531521, %v1457_v47  ;;  %v3496_v13 = vsel %vm1448_vm12, %v1450_v60, %v1446_v49  ;;  %v1517_v15 = vmul.f32 %v1509_v59, %v3412_v40  ;;  %v2607_v59 = vld [vmem:[%s3480_s4 + $0xb0] sm:$0xff]  ;;  %1895 = vmatpush.bf16.msra.mxu2 %v2599_v37 }
 0x912   : > { %v1537_v55 = vmul.f32 %v1529_v39, %v3422_v56  ;;  %v1460_v51 = vmul.f32 1.0614054, %v3496_v13  ;;  %v3501_v3 = vadd.f32 1.0, %v1322_v28  ;;  %v1534_v25 = vmul.f32 %v1526_v43, %v3387_v9  ;;  %v2590_v39 = vld [vmem:[%s3480_s4 + $0x28] sm:$0xff]  ;;  %1924 = vmatpush.bf16.msrb.mxu0 %v2614_v18  ;;  %1909 = vmatpush.bf16.msra.mxu3 %v2607_v59 }
 0x913   : > { %v1463_v32 = vadd.f32 -1.4531521, %v1455_v22  ;;  %v1473_v50 = vmul.f32 %v1465_v12, %v3486_v35  ;;  %v1540_v40 = vmul.f32 %v1532_v61, %v3425_v2  ;;  %v3511_v56 = vadd.f32 %v1276_v14, %v1071_v58  ;;  %1882 = vmatpush.bf16.msra.mxu1 %v2590_v39  ;;  %v2589_v61 = vld [vmem:[%s3480_s4 + $0x20] sm:$0xff]  ;;  %v2598_v14 = vld [vmem:[%s3480_s4 + $0x68] sm:$0xff] }
 0x914   : > { %v1468_v29 = vadd.f32 -1.4531521, %v1460_v51  ;;  %2717 = vrcp.f32 %v3501_v3  ;;  %v1520_v9 = vmul.f32 %v1512_v5, %v3416_v45  ;;  %v1486_v22 = vmul.f32 %v1478_v11, %v3448_v34 }
 0x915   : > { %v1481_v46 = vadd.f32 1.4214138, %v1473_v50  ;;  %v2716_v31 = vpop.eup %2715  ;;  %v3518_v2 = vmul.f32 0.5, %v3352_v52  ;;  %v3520_v36 = vmul.f32 %v2714_v16, %v1517_v15  ;;  %v1549_v30 = vmul.f32 1.442695, %v1537_v55  ;;  %v2606_v15 = vld [vmem:[%s3480_s4 + $0xa8] sm:$0xff]  ;;  %1896 = vmatpush.bf16.msra.mxu2 %v2598_v14 }
 0x916   : > { %v1476_v58 = vmul.f32 %v1468_v29, %v3496_v13  ;;  %v3526_v45 = vmul.f32 0.5, %v3354_v53  ;;  %v1543_v41 = vmul.f32 1.442695, %v1534_v25  ;;  %v1471_v43 = vmul.f32 %v1463_v32, %v3462_v6  ;;  %1925 = vmatpush.bf16.msrb.mxu0 %v2613_v19  ;;  %1910 = vmatpush.bf16.msra.mxu3 %v2606_v15  ;;  %v2588_v50 = vld [vmem:[%s3480_s4 + $0x18] sm:$0xff] }
 0x917   : > { %v1489_v52 = vmul.f32 %v1481_v46, %v3486_v35  ;;  %v1555_v16 = vmul.f32 1.442695, %v1540_v40  ;;  %v3531_v60 = vmul.f32 0.70710677, %v3511_v56  ;;  %v3534_v28 = vmul.f32 %v2716_v31, %v1520_v9  ;;  %1883 = vmatpush.bf16.msra.mxu1 %v2589_v61  ;;  %v2612_v9 = vld [vmem:[%s3480_s4 + $0xd8] sm:$0xff] }
 0x918   : > { %v1484_v47 = vadd.f32 1.4214138, %v1476_v58  ;;  %v1494_v53 = vadd.f32 -0.28449672, %v1486_v22  ;;  %v1565_v5 = vsub.f32 1.0, %v3520_v36  ;;  %2719 = vpow2.f32 %v1549_v30  ;;  %v2597_v30 = vld [vmem:[%s3480_s4 + $0x60] sm:$0xff] }
 0x919   : > { %v1497_v49 = vadd.f32 -0.28449672, %v1489_v52  ;;  %v3543_v12 = vand.u32 2147483647, %v3531_v60  ;;  %2721 = vpow2.f32 %v1543_v41  ;;  %v1479_v55 = vadd.f32 1.4214138, %v1471_v43  ;;  %1897 = vmatpush.bf16.msra.mxu2 %v2597_v30 }
 0x91a   : > { %v3538_v23 = vpop.eup %2717  ;;  %v1492_v11 = vmul.f32 %v1484_v47, %v3496_v13  ;;  %vm1576_vm14 = vcmp.ge.f32.partialorder %v3361_v57, 0.0  ;;  %v1527_v24 = vsub.f32 0.0, %v3390_v10  ;;  %2723 = vpow2.f32 %v1555_v16  ;;  %v2605_v58 = vld [vmem:[%s3480_s4 + $0xa0] sm:$0xff]  ;;  %1926 = vmatpush.bf16.msrb.mxu0 %v2612_v9  ;;  %v2603_v30 = vld [vmem:[%s3480_s4 + $0x90] sm:$0xff] }
 0x91b   : > { %v1505_v51 = vmul.f32 %v1497_v49, %v3486_v35  ;;  %v1409_v17 = vmul.f32 %v3538_v23, %v3501_v3  ;;  %v1323_v32 = vmul.f32 0.3275911, %v3543_v12  ;;  %v1568_v29 = vsub.f32 1.0, %v3534_v28  ;;  %1884 = vmatpush.bf16.msra.mxu1 %v2588_v50  ;;  %1911 = vmatpush.bf16.msra.mxu3 %v2605_v58  ;;  %v2611_v28 = vld [vmem:[%s3480_s4 + $0xd0] sm:$0xff]  ;;  %v2610_v50 = vld [vmem:[%s3480_s4 + $0xc8] sm:$0xff] }
 0x91c   : > { %v1500_v25 = vadd.f32 -0.28449672, %v1492_v11  ;;  %v1502_v40 = vmul.f32 %v1494_v53, %v3448_v34  ;;  %v1581_v22 = vsub.f32 0.0, %v1565_v5  ;;  %v1419_v31 = vand.u32 2147483648, %v3501_v3 }
 0x91d   : > { %v1513_v39 = vadd.f32 0.2548296, %v1505_v51  ;;  %v1410_v18 = vsub.f32 1.0, %v1409_v17  ;;  %v3559_v36 = vadd.f32 1.0, %v1323_v32  ;;  %vm1414_vm15 = vweird.f32 %v3538_v23  ;;  %v2596_v51 = vld [vmem:[%s3480_s4 + $0x58] sm:$0xff]  ;;  %v2586_v32 = vld [vmem:[%s3480_s4 + $0x8] sm:$0xff] }
 0x91e   : > { %v1508_v46 = vmul.f32 %v1500_v25, %v3496_v13  ;;  %v1417_v41 = vand.u32 2147483647, %v3501_v3  ;;  %v2720_v43 = vpop.eup %2719  ;;  %v1487_v52 = vmul.f32 %v1479_v55, %v3462_v6  ;;  %v3569_v47 = vmul.f32 %v1527_v24, %v3390_v10  ;;  %v2604_v17 = vld [vmem:[%s3480_s4 + $0x98] sm:$0xff]  ;;  %1927 = vmatpush.bf16.msrb.mxu0 %v2611_v28  ;;  %1898 = vmatpush.bf16.msra.mxu2 %v2596_v51 }
 0x91f   : > { %v1521_v37 = vmul.f32 %v1513_v39, %v3486_v35  ;;  %v1411_v59 = vmul.f32 %v3538_v23, %v1410_v18  ;;  %2725 = vrcp.f32 %v3559_v36  ;;  %v2587_v35 = vld [vmem:[%s3480_s4 + $0x10] sm:$0xff]  ;;  %v3574_v53 = vpop.eup %2721  ;;  %v1584_v49 = vsub.f32 0.0, %v1568_v29  ;;  %1912 = vmatpush.bf16.msra.mxu3 %v2604_v17 }
 0x920   : > { %v1516_v16 = vadd.f32 0.2548296, %v1508_v46  ;;  %vm1413_vm0 = vweird.f32 %v3501_v3  ;;  %v2724_v11 = vpop.eup %2723  ;;  %v1589_v10 = vsel %vm1573_vm13, %v1565_v5, %v1581_v22  ;;  %v1297_v14 = vmul.f32 0.5, %v3400_v44  ;;  %1885 = vmatpush.bf16.msra.mxu1 %v2587_v35 }
 0x921   : > { %v1561_v61 = vmul.f32 %v2720_v43, %v1521_v37  ;;  %v1412_v19 = vadd.f32 %v3538_v23, %v1411_v59  ;;  %vm1415_vm2 = vmor %vm1413_vm0, %vm1414_vm15  ;;  %v1420_v55 = vor.u32 1.1754944e-38, %v1419_v31  ;;  %v1510_v24 = vadd.f32 0.2548296, %v1502_v40  ;;  %v2595_v31 = vld [vmem:[%s3480_s4 + $0x50] sm:$0xff]  ;;  %v2585_v43 = vld [vmem:[%s3480_s4] sm:$0xff] }
 0x922   : > { %v1524_v15 = vmul.f32 %v1516_v16, %v3496_v13  ;;  %vm1418_vm3 = vcmp.eq.f32.partialorder %v1417_v41, 8.507059e+37  ;;  %v1495_v54 = vadd.f32 -0.28449672, %v1487_v52  ;;  %v1530_v13 = vsub.f32 0.0, %v3476_v33  ;;  %1928 = vmatpush.bf16.msrb.mxu0 %v2610_v50  ;;  %1899 = vmatpush.bf16.msra.mxu2 %v2595_v31  ;;  %v2609_v52 = vld [vmem:[%s3480_s4 + $0xc0] sm:$0xff] }
 0x923   : > { %v1569_v25 = vsub.f32 1.0, %v1561_v61  ;;  %v1416_v3 = vsel %vm1415_vm2, %v3538_v23, %v1412_v19  ;;  %v1597_v39 = vadd.f32 1.0, %v1589_v10  ;;  %v1592_v40 = vsel %vm1576_vm14, %v1568_v29, %v1584_v49  ;;  %1913 = vmatpush.bf16.msra.mxu3 %v2603_v30  ;;  %v2602_v10 = vld [vmem:[%s3480_s4 + $0x88] sm:$0xff] }
 0x924   : > { %v1564_v5 = vmul.f32 %v2724_v11, %v1524_v15  ;;  %v3587_v44 = vsel %vm1418_vm3, %v1420_v55, %v1416_v3  ;;  %vm1577_vm4 = vcmp.ge.f32.partialorder %v3405_v48, 0.0  ;;  %v1300_v22 = vmul.f32 0.5, %v3402_v27  ;;  %1886 = vmatpush.bf16.msra.mxu1 %v2586_v32  ;;  %v2601_v32 = vld [vmem:[%s3480_s4 + $0x80] sm:$0xff] }
 0x925   : > { %v1585_v23 = vsub.f32 0.0, %v1569_v25  ;;  %v1458_v18 = vmul.f32 1.0614054, %v3587_v44  ;;  %v2726_v9 = vpop.eup %2725  ;;  %vm1580_vm5 = vcmp.ge.f32.partialorder %v3408_v38, 0.0  ;;  %v1518_v58 = vmul.f32 %v1510_v24, %v3448_v34 }
 0x926   : > { %v1572_v46 = vsub.f32 1.0, %v1564_v5  ;;  %v1424_v29 = vmul.f32 %v2726_v9, %v3559_v36  ;;  %v1600_v59 = vadd.f32 1.0, %v1592_v40  ;;  %v1538_v41 = vmul.f32 %v1530_v13, %v3476_v33  ;;  %v2594_v33 = vld [vmem:[%s3480_s4 + $0x48] sm:$0xff]  ;;  %1929 = vmatpush.bf16.msrb.mxu0 %v2609_v52  ;;  %v2593_v13 = vld [vmem:[%s3480_s4 + $0x40] sm:$0xff] }
 0x927   : > { %v1593_v37 = vsel %vm1577_vm4, %v1569_v25, %v1585_v23  ;;  %v1466_v57 = vadd.f32 -1.4531521, %v1458_v18  ;;  %v1605_v16 = vmul.f32 %v1597_v39, %v3518_v2  ;;  %v1503_v34 = vmul.f32 %v1495_v54, %v3462_v6  ;;  %1900 = vmatpush.bf16.msra.mxu2 %v2594_v33  ;;  %1914 = vmatpush.bf16.msra.mxu3 %v2602_v10 }
 0x928   : > { %v1601_v48 = vadd.f32 1.0, %v1593_v37  ;;  %v1588_v27 = vsub.f32 0.0, %v1572_v46  ;;  %v1425_v28 = vsub.f32 1.0, %v1424_v29  ;;  %v1432_v19 = vand.u32 2147483647, %v3559_v36  ;;  %1887 = vmatpush.bf16.msra.mxu1 %v2585_v43 }
 0x929   : > { %v1474_v35 = vmul.f32 %v1466_v57, %v3587_v44  ;;  %v1434_v11 = vand.u32 2147483648, %v3559_v36  ;;  %vm1429_vm6 = vweird.f32 %v2726_v9  ;;  %v1608_v2 = vmul.f32 %v1600_v59, %v3526_v45 }
 0x92a   : > { %v1609_v49 = vmul.f32 %v1601_v48, %v1297_v14  ;;  %v1596_v61 = vsel %vm1580_vm5, %v1572_v46, %v1588_v27  ;;  %v1426_v51 = vmul.f32 %v2726_v9, %v1425_v28  ;;  %v1558_v14 = vmul.f32 %v3574_v53, %v1518_v58 }
 0x92b   : > { %v1604_v15 = vadd.f32 1.0, %v1596_v61  ;;  %v1482_v55 = vadd.f32 1.4214138, %v1474_v35  ;;  %v1551_v17 = vmul.f32 1.442695, %v1538_v41  ;;  %vm1428_vm7 = vweird.f32 %v3559_v36  ;;  %1901 = vmatpush.bf16.msra.mxu2 %v2593_v13  ;;  %1915 = vmatpush.bf16.msra.mxu3 %v2601_v32 }
 0x92c   : > { %v1613_v38 = vpack.c.bf16 %v1609_v49, %v1605_v16  ;;  %v1427_v3 = vadd.f32 %v2726_v9, %v1426_v51  ;;  %v1545_v54 = vmul.f32 1.442695, %v3569_v47  ;;  %vm1430_vm8 = vmor %vm1428_vm7, %vm1429_vm6  ;;  %v1435_v5 = vor.u32 1.1754944e-38, %v1434_v11 }
 0x92d   : > { %v1612_v24 = vmul.f32 %v1604_v15, %v1300_v22  ;;  %v1490_v25 = vmul.f32 %v1482_v55, %v3587_v44  ;;  %vm1433_vm9 = vcmp.eq.f32.partialorder %v1432_v19, 8.507059e+37  ;;  %2727 = vpow2.f32 %v1551_v17 }
 0x92e   : > { %1888 = vmatmul.bf16.vlgmr.msra.gmra.mxu1 %v1613_v38  ;;  %v1431_v53 = vsel %vm1430_vm8, %v2726_v9, %v1427_v3  ;;  %v1531_v40 = vsub.f32 0.0, %v3543_v12  ;;  %v1566_v23 = vsub.f32 1.0, %v1558_v14  ;;  %v1511_v18 = vadd.f32 0.2548296, %v1503_v34 }
 0x92f   : > { %v1616_v45 = vpack.c.bf16 %v1612_v24, %v1608_v2  ;;  %v1498_v50 = vadd.f32 -0.28449672, %v1490_v25  ;;  %v1436_v39 = vsel %vm1433_vm9, %v1435_v5, %v1431_v53  ;;  %2729 = vpow2.f32 %v1545_v54 }
 0x930   : > { %v1459_v47 = vmul.f32 1.0614054, %v1436_v39  ;;  %v1539_v31 = vmul.f32 %v1531_v40, %v3543_v12  ;;  %v1582_v30 = vsub.f32 0.0, %v1566_v23  ;;  %v1519_v9 = vmul.f32 %v1511_v18, %v3462_v6 }
 0x931   : > { %v1506_v36 = vmul.f32 %v1498_v50, %v3587_v44  ;;  %1930 = vmatmul.bf16.vlgmr.msrb.gmra.mxu0 %v1616_v45  ;;  %vm1574_vm10 = vcmp.ge.f32.partialorder %v3381_v7, 0.0  ;;  %vm1578_vm11 = vcmp.ge.f32.partialorder %v3470_v20, 0.0  ;;  %v1294_v49 = vmul.f32 0.5, %v3373_v63 }
 0x932   : > { %v1467_v46 = vadd.f32 -1.4531521, %v1459_v47  ;;  %v1553_v27 = vmul.f32 1.442695, %v1539_v31  ;;  %v1590_v41 = vsel %vm1574_vm10, %v1566_v23, %v1582_v30  ;;  %v1298_v61 = vmul.f32 0.5, %v3459_v62 }
 0x933   : > { %v1514_v22 = vadd.f32 0.2548296, %v1506_v36  ;;  %v2728_v57 = vpop.eup %2727  ;;  %v1598_v12 = vadd.f32 1.0, %v1590_v41  ;;  %vm1575_vm12 = vcmp.ge.f32.partialorder %v3384_v8, 0.0  ;;  %vm1579_vm13 = vcmp.ge.f32.partialorder %v3531_v60, 0.0 }
 0x934   : > { %v1475_v37 = vmul.f32 %v1467_v46, %v1436_v39  ;;  %2731 = vpow2.f32 %v1553_v27  ;;  %v1295_v62 = vmul.f32 0.5, %v3378_v4  ;;  %v1299_v24 = vmul.f32 0.5, %v3511_v56  ;;  %v2658_v8 = vld [vmem:[%s1683_s27] ss:$0 sm:$0xff] }
 0x935   : > { %v1522_v58 = vmul.f32 %v1514_v22, %v3587_v44  ;;  %v2730_v48 = vpop.eup %2729  ;;  %v1606_v11 = vmul.f32 %v1598_v12, %v1294_v49 }
 0x936   : > { %v1483_v59 = vadd.f32 1.4214138, %v1475_v37  ;;  %v1559_v43 = vmul.f32 %v2730_v48, %v1519_v9 }
 0x937   : > { %v1562_v29 = vmul.f32 %v2728_v57, %v1522_v58 }
 0x938   : > { %v1491_v16 = vmul.f32 %v1483_v59, %v1436_v39  ;;  %v1567_v6 = vsub.f32 1.0, %v1559_v43 }
 0x939   : > { %v1570_v52 = vsub.f32 1.0, %v1562_v29 }
 0x93a   : > { %v1499_v35 = vadd.f32 -0.28449672, %v1491_v16  ;;  %v1583_v10 = vsub.f32 0.0, %v1567_v6  ;;  %v2732_v55 = vpop.eup %2731 }
 0x93b   : > { %v1586_v34 = vsub.f32 0.0, %v1570_v52 }
 0x93c   : > { %v1507_v28 = vmul.f32 %v1499_v35, %v1436_v39  ;;  %v1591_v20 = vsel %vm1575_vm12, %v1567_v6, %v1583_v10 }
 0x93d   : > { %v1594_v44 = vsel %vm1578_vm11, %v1570_v52, %v1586_v34  ;;  %v1599_v17 = vadd.f32 1.0, %v1591_v20 }
 0x93e   : > { %v1602_v19 = vadd.f32 1.0, %v1594_v44  ;;  %v1515_v7 = vadd.f32 0.2548296, %v1507_v28 }
 0x93f   : > { %v1607_v3 = vmul.f32 %v1599_v17, %v1295_v62 }
 0x940   : > { %v1610_v33 = vmul.f32 %v1602_v19, %v1298_v61  ;;  %v1523_v15 = vmul.f32 %v1515_v7, %v1436_v39  ;;  %v2733_v19 = vld [vmem:[%s3684_s18] ss:$0 sm:$0xff] (%p253_p0) }
 0x942   : > { %v1614_v51 = vpack.c.bf16 %v1610_v33, %v1606_v11  ;;  %v1563_v2 = vmul.f32 %v2732_v55, %v1523_v15 }
 0x944   : > { %1902 = vmatmul.bf16.vlgmr.msra.gmra.mxu2 %v1614_v51  ;;  %v1571_v14 = vsub.f32 1.0, %v1563_v2 }
 0x946   : > { %v1587_v38 = vsub.f32 0.0, %v1571_v14 }
 0x948   : > { %v1595_v63 = vsel %vm1579_vm13, %v1571_v14, %v1587_v38 }
 0x949   : > { %v1603_v25 = vadd.f32 1.0, %v1595_v63 }
 0x94b   : > { %v1611_v54 = vmul.f32 %v1603_v25, %v1299_v24 }
 0x94d   : > { %v1615_v5 = vpack.c.bf16 %v1611_v54, %v1607_v3 }
 0x94f   : > { %1916 = vmatmul.bf16.vlgmr.msra.gmra.mxu3 %v1615_v5 }
 0x9ab   : > { %v1889_v13 = vpop.f32.mrf.mxu1 }
 0x9ac   : > { %v1890_v45 = vadd.f32 %v2658_v8, %v1889_v13 }
 0x9ae   : > { %v1931_v60 = vpop.f32.mrf.mxu0 }
 0x9b3   : > { %v1891_v53 = vpop.f32.mrf.mxu1 }
 0x9b4   : > { %v1892_v56 = vadd.f32 %v2658_v8, %v1891_v53 }
 0x9b6   : > { %v1933_v46 = vpop.f32.mrf.mxu0 }
 0x9c7   : > { %v1903_v32 = vpop.f32.mrf.mxu2 }
 0x9c8   : > { %v1904_v50 = vadd.f32 %v1903_v32, %v1890_v45 }
 0x9cf   : > { %v1905_v40 = vpop.f32.mrf.mxu2 }
 0x9d0   : > { %v1906_v36 = vadd.f32 %v1905_v40, %v1892_v56 }
 0x9d2   : > { %v1917_v39 = vpop.f32.mrf.mxu3 }
 0x9d3   : > { %v1918_v4 = vadd.f32 %v1917_v39, %v1904_v50 }
 0x9d5   : > { %v1932_v23 = vadd.f32 %v1931_v60, %v1918_v4 }
 0x9d7   : > { %v1936_v18 = vadd.f32 %v1932_v23, %v3225_v21  }
 0x9d9   : > { %v3700_v32 = vmov %v1936_v18 }
 0x9da   : > { %v1919_v47 = vpop.f32.mrf.mxu3 }
 0x9db   : > { %v1920_v22 = vadd.f32 %v1919_v47, %v1906_v36 }
 0x9dd   : > { %v1934_v31 = vadd.f32 %v1933_v46, %v1920_v22  ;;  %255 = sbr.rel (!%p253_p0) target bundleno = 197 (0xc5), region = 128 }
 0x9df   : > { %v1937_v30 = vadd.f32 %v1934_v31, %v3229_v26  }
 0x9e1   : > { %v3699_v33 = vmov %v1937_v30  ;;  %v1943_v9 = vsel (%p253_p0), %vm265_vm1, %v1937_v30, 0.0 }
 0x9e2   :  { %1944 = vadd.xlane.f32.xlu0 %v1943_v9  ;;  %v2734_v33 = vld [vmem:[%s3685_s19] ss:$0 sm:$0xff] }
 0x9ea   :  { %1940 = vadd.xlane.f32.xlu0 %v1936_v18 }
 0xa55   :  { %v1945_v21 = vpop.xlane.xlu0 %1944 }
 0xa56   :  { %v1954_v26 = vmul.f32 %v1945_v21, %v3045_v42 }
 0xa58   :  { %v1956_v59 = vsub.f32 %v1937_v30, %v1954_v26 }
 0xa5a   :  { %v1958_v48 = vmul.f32 %v1956_v59, %v1956_v59 }
 0xa5c   :  { %v1961_v27 = vsel %vm265_vm1, %v1958_v48, 0.0 }
 0xa5d   :  { %v1941_v58 = vpop.xlane.xlu0 %1940 }
 0xa5e   :  { %v1953_v37 = vmul.f32 %v1941_v58, %v3045_v42 }
 0xa60   :  { %v1955_v57 = vsub.f32 %v1936_v18, %v1953_v37 }
 0xa62   :  { %v1957_v29 = vmul.f32 %v1955_v57, %v1955_v57 }
 0xa64   :  { %1959 = vadd.xlane.f32.xlu1 %v1957_v29 }
 0xa6c   :  { %1962 = vadd.xlane.f32.xlu1 %v1961_v27 }
 0xad7   :  { %v1960_v41 = vpop.xlane.xlu1 %1959 }
 0xad8   :  { %v1964_v0 = vmul.f32 %v1960_v41, %v3045_v42 }
 0xada   :  { %v1966_v1 = vadd.f32 1e-06, %v1964_v0 }
 0xadc   :  { %2735 = vrsqrt.f32 %v1966_v1  ;;  %vm1974_vm1 = vweird.f32 %v1966_v1 }
 0xadf   :  { %v1963_v43 = vpop.xlane.xlu1 %1962 }
 0xae0   :  { %v1965_v52 = vmul.f32 %v1963_v43, %v3045_v42 }
 0xae2   :  { %v2736_v16 = vpop.eup %2735  ;;  %v1967_v34 = vadd.f32 1e-06, %v1965_v52 }
 0xae3   :  { %v1969_v35 = vmul.f32 %v2736_v16, %v1966_v1  ;;  %vm1975_vm14 = vweird.f32 %v2736_v16 }
 0xae4   :  { %2737 = vrsqrt.f32 %v1967_v34  ;;  %vm1976_vm15 = vmor %vm1974_vm1, %vm1975_vm14  ;;  %vm1984_vm2 = vweird.f32 %v1967_v34 }
 0xae5   :  { %v1970_v12 = vmul.f32 %v2736_v16, %v1969_v35 }
 0xae7   :  { %v1971_v6 = vmul.f32 0.5, %v1970_v12 }
 0xae9   :  { %v1972_v44 = vsub.f32 1.5, %v1971_v6 }
 0xaea   :  { %v2738_v28 = vpop.eup %2737 }
 0xaeb   :  { %v1973_v49 = vmul.f32 %v2736_v16, %v1972_v44  ;;  %v1979_v61 = vmul.f32 %v2738_v28, %v1967_v34  ;;  %vm1985_vm0 = vweird.f32 %v2738_v28 }
 0xaec   :  { %vm1986_vm3 = vmor %vm1984_vm2, %vm1985_vm0 }
 0xaed   :  { %v1977_v7 = vsel %vm1976_vm15, %v2736_v16, %v1973_v49  ;;  %v1980_v11 = vmul.f32 %v2738_v28, %v1979_v61 }
 0xaee   :  { %v1988_v42 = vmul.f32 %v1977_v7, %v1955_v57 }
 0xaef   :  { %v1981_v10 = vmul.f32 0.5, %v1980_v11 }
 0xaf0   :  { %v1993_v15 = vmul.f32 %v2733_v19, %v1988_v42 }
 0xaf1   :  { %v1982_v55 = vsub.f32 1.5, %v1981_v10 }
 0xaf2   :  { %v1998_v51 = vadd.f32 %v2734_v33, %v1993_v15 }
 0xaf3   :  { %v1983_v2 = vmul.f32 %v2738_v28, %v1982_v55 }
 0xaf4   :  { %2000 = vst [vmem:[#allocation8 - $0x1] sm:$0x1e] %v1998_v51 }
 0xaf5   :  { %v1987_v20 = vsel %vm1986_vm3, %v2738_v28, %v1983_v2  ;;  %2002 = vst [vmem:[#allocation8 - $0x2] sm:$0xc0] %v1998_v51 }
 0xaf6   :  { %v1989_v14 = vmul.f32 %v1987_v20, %v1956_v59 }
 0xaf8   :  { %v1994_v38 = vmul.f32 %v2733_v19, %v1989_v14 }
 0xafa   :  { %v1999_v17 = vadd.f32 %v2734_v33, %v1994_v38 }
 0xafc   :  { %2003 = vst [vmem:[#allocation8 + $0x6] sm:$0x3] %v1999_v17 }
 0xafd   :  { %2016 = dma.vmem_to_hbm [thread:$0]  %s2009_s12, 128, %s2011_s15, [#allocation5], %s2845_s30, %s2845_s30, %s2846_s0  }
 0xafe   :  { %2827 = dma.done.wait [#allocation5], 128  }
 0xaff   :  { %2828 = vsyncadd [#allocation5], 4294967168 }
 0xb00   :  { %2021 = vsyncpa [#allocation4], 1 }
 0xb01   :  { %2022 = vsyncpa [#allocation7], 1 }
 0xb02   :  { %2023 = vsyncpa [#allocation5], 1 }

</bundles_post_ra>
